<compile_context>
chip_gen: v5e
topology: v5e:2x2
jax: 0.10.0
libtpu: 0.0.40
codegen_flags: <defaults>
</compile_context>

<pallas_src>
import functools

import jax
import jax.numpy as jnp
from jax.experimental import pallas as pl
from jax.experimental.pallas import tpu as pltpu


# ----------------------------------------------------------------------------
# Helpers
# ----------------------------------------------------------------------------
def _round_up(x, m):
    return ((x + m - 1) // m) * m


def _vmem_limit_bytes():
    # Generation-aware VMEM budget: ~3/4 of physical, capped at 100 MiB.
    #   v5e / v6e: 128 MiB physical -> 96 MiB;  v7x: 64 MiB physical -> 48 MiB.
    try:
        cap = int(pltpu.get_tpu_info().vmem_capacity_bytes)
    except Exception:
        cap = 64 << 20  # conservative (v7x-sized) fallback
    return min((cap * 3) // 4, 100 << 20)


_VMEM_LIMIT = _vmem_limit_bytes()

# Below this MAC count, per-call + pad overhead dwarfs the matmul; let XLA
# fuse x @ W + b instead of dispatching the Pallas kernel (~256^3 MACs).
_PALLAS_MAC_THRESHOLD = 1 << 24


def _pick_tm(m):
    # Sublane-aligned M tile; prefer large tiles to amortize per-step overhead.
    for c in (512, 256, 128):
        if m >= c:
            return c
    return _round_up(max(m, 8), 8)  # tiny M: single 8-aligned block


def _largest_tile_divisor(dim):
    # Largest lane-dense tile (multiple of 128) that divides a pre-padded dim.
    for c in (1024, 512, 256, 128):
        if dim % c == 0:
            return c
    return 128


# ----------------------------------------------------------------------------
# Pallas kernels
# ----------------------------------------------------------------------------
def _linear_kresident_kernel(x_ref, w_ref, b_ref, o_ref):
    # K is fully resident: one MXU dot per output tile, no accumulator scratch.
    # x streamed as f32 and cast to bf16 right before the dot (no standalone
    # HBM cast pass for activations); W is pre-cast bf16 at init.
    x_bf16 = x_ref[...].astype(jnp.bfloat16)
    acc = jnp.dot(x_bf16, w_ref[...], preferred_element_type=jnp.float32)
    o_ref[...] = (acc + b_ref[...]).astype(o_ref.dtype)


def _linear_ktiled_kernel(x_ref, w_ref, b_ref, o_ref):
    # Large-K fallback: accumulate directly into the (resident) f32 output
    # tile; bias initializes the accumulator so it is added exactly once.
    k = pl.program_id(2)

    @pl.when(k == 0)
    def _():
        o_ref[...] = jnp.broadcast_to(b_ref[...], o_ref.shape).astype(o_ref.dtype)

    o_ref[...] += jnp.dot(
        x_ref[...].astype(jnp.bfloat16),
        w_ref[...],
        preferred_element_type=jnp.float32,
    )


# ----------------------------------------------------------------------------
# Pallas forward: y = x @ W + b
# ----------------------------------------------------------------------------
@functools.partial(jax.jit, static_argnames=("n_out",))
def _linear_forward_pallas(x, w_bf16_p, b_f32_p, *, n_out):
    """x: (M, K) f32; w_bf16_p: (Kp, Np) bf16 pre-padded; b_f32_p: (1, Np) f32."""
    M, K = x.shape
    Kp, Np = w_bf16_p.shape

    tm = _pick_tm(M)
    tn = _largest_tile_divisor(Np)
    Mp = _round_up(M, tm)

    # Keep >= 2 blocks on a parallel axis when possible so v7x's 2 TensorCores
    # both engage (neutral on v5e/v6e, which have 1 TC).
    if (Mp // tm) == 1 and (Np // tn) == 1 and tn >= 256:
        tn //= 2

    # Pad activations only when needed (padded K columns hit zero weight rows).
    if Mp != M or Kp != K:
        x_p = jnp.pad(x, ((0, Mp - M), (0, Kp - K)))
    else:
        x_p = x

    cost = pl.CostEstimate(
        flops=2 * M * K * n_out,
        transcendentals=0,
        bytes_accessed=M * K * 4 + K * n_out * 2 + M * n_out * 4 + n_out * 4,
    )

    # VMEM plan for the K-resident kernel (double-buffered in/out tiles).
    kres_bytes = 2 * (tm * Kp * 4 + Kp * tn * 2 + tn * 4 + tm * tn * 4)

    if kres_bytes <= int(_VMEM_LIMIT * 0.9):
        grid = (Mp // tm, Np // tn)
        out = pl.pallas_call(
            _linear_kresident_kernel,
            out_shape=jax.ShapeDtypeStruct((Mp, Np), jnp.float32),
            grid_spec=pltpu.PrefetchScalarGridSpec(
                num_scalar_prefetch=0,
                grid=grid,
                in_specs=[
                    pl.BlockSpec((tm, Kp), lambda i, j: (i, 0)),
                    pl.BlockSpec((Kp, tn), lambda i, j: (0, j)),
                    pl.BlockSpec((1, tn), lambda i, j: (0, j)),
                ],
                out_specs=pl.BlockSpec((tm, tn), lambda i, j: (i, j)),
            ),
            compiler_params=pltpu.CompilerParams(
                dimension_semantics=("parallel", "parallel"),
                vmem_limit_bytes=_VMEM_LIMIT,
            ),
            cost_estimate=cost,
        )(x_p, w_bf16_p, b_f32_p)
    else:
        # K too large for a resident tile: K-innermost 3-D grid, accumulate
        # directly into the f32 output tile (no scratch accumulator).
        tk = _largest_tile_divisor(Kp)
        grid = (Mp // tm, Np // tn, Kp // tk)
        out = pl.pallas_call(
            _linear_ktiled_kernel,
            out_shape=jax.ShapeDtypeStruct((Mp, Np), jnp.float32),
            grid_spec=pltpu.PrefetchScalarGridSpec(
                num_scalar_prefetch=0,
                grid=grid,
                in_specs=[
                    pl.BlockSpec((tm, tk), lambda i, j, k: (i, k)),
                    pl.BlockSpec((tk, tn), lambda i, j, k: (k, j)),
                    pl.BlockSpec((1, tn), lambda i, j, k: (0, j)),
                ],
                out_specs=pl.BlockSpec((tm, tn), lambda i, j, k: (i, j)),
            ),
            compiler_params=pltpu.CompilerParams(
                dimension_semantics=("parallel", "parallel", "arbitrary"),
                vmem_limit_bytes=_VMEM_LIMIT,
            ),
            cost_estimate=cost,
        )(x_p, w_bf16_p, b_f32_p)

    if Mp != M or Np != n_out:
        out = out[:M, :n_out]
    return out


def _linear_forward(x, w_f32, b_f32, w_bf16_p, b_f32_p):
    M, K = x.shape
    _, N = w_f32.shape
    if M * K * N <= _PALLAS_MAC_THRESHOLD:
        # Tiny Linear: dispatch overhead dominates; let XLA fuse it (f32).
        return (x @ w_f32 + b_f32).astype(x.dtype)
    # Precision contract: MXU operands are bf16, accumulation is f32.
    return _linear_forward_pallas(x, w_bf16_p, b_f32_p, n_out=N)


# ----------------------------------------------------------------------------
# wrapper_module equivalent
# ----------------------------------------------------------------------------
class WrapperModule:
    """JAX/Pallas equivalent of the PyTorch wrapper_module.

    forward(args) -> inner(args, *extra_args)
    """

    def __init__(self, inner, *extra_args):
        self.inner = inner
        self.extra_args = extra_args

    def __call__(self, args):
        return self.inner(args, *self.extra_args)


class InnerLinear:
    """Representative inner module: deterministic Linear layer (Pallas matmul)."""

    def __init__(self, d_in, d_out, key):
        kw, kb = jax.random.split(key)
        # torch nn.Linear stores weight (out, in); kept transposed here (in, out).
        self.weight = jax.random.normal(kw, (d_in, d_out), jnp.float32) * 0.02
        self.bias = jax.random.normal(kb, (1, d_out), jnp.float32) * 0.02

        # Hoisted out of the per-call HBM hot path: cast + pad W/b exactly once.
        kp = _round_up(d_in, 128)
        np_ = _round_up(d_out, 128)
        self.weight_bf16_p = jnp.pad(
            self.weight, ((0, kp - d_in), (0, np_ - d_out))
        ).astype(jnp.bfloat16)
        self.bias_f32_p = jnp.pad(self.bias, ((0, 0), (0, np_ - d_out)))

    def __call__(self, x, *extra_args):
        # extra_args are accepted (wrapper_module forwards them) but the
        # representative Linear inner does not consume them.
        return _linear_forward(
            x, self.weight, self.bias, self.weight_bf16_p, self.bias_f32_p
        )


# ----------------------------------------------------------------------------
# Demo / smoke test
# ----------------------------------------------------------------------------
if __name__ == "__main__":
    key = jax.random.PRNGKey(0)
    k_param, k_x = jax.random.split(key)

    # Small shapes, but above the Pallas dispatch threshold so the kernel runs;
    # deliberately non-128-aligned dims to exercise padding + output slicing.
    B, D_IN, D_OUT = 200, 320, 448  # 28.7M MACs > threshold

    inner = InnerLinear(D_IN, D_OUT, k_param)
    wrapped = WrapperModule(inner)  # no extra_args, same as wrapper_module(inner)

    x = jax.random.normal(k_x, (B, D_IN), jnp.float32)

    y = jax.block_until_ready(wrapped(x))

    # Reference: same bf16-operand / f32-accumulation math as the kernel.
    y_ref = (
        jnp.dot(
            x.astype(jnp.bfloat16),
            inner.weight.astype(jnp.bfloat16),
            preferred_element_type=jnp.float32,
        )
        + inner.bias
    ).astype(jnp.float32)

    assert y.shape == (B, D_OUT), y.shape
    assert y.dtype == jnp.float32, y.dtype
    max_err = float(jnp.max(jnp.abs(y - y_ref)))
    assert jnp.allclose(y, y_ref, atol=1e-2, rtol=1e-2), max_err

    print("KERNEL_OK")
</pallas_src>

<mosaic_0001>
module attributes {stable_mosaic.version = 11 : i64} {
  func.func @_linear_kresident_kernel(%arg0: i32, %arg1: i32, %arg2: memref<128x384xf32, #tpu.memory_space<vmem>>, %arg3: memref<384x512xbf16, #tpu.memory_space<vmem>>, %arg4: memref<1x512xf32, #tpu.memory_space<vmem>>, %arg5: memref<128x512xf32, #tpu.memory_space<vmem>>) attributes {dimension_semantics = [#tpu.dimension_semantics<parallel>, #tpu.dimension_semantics<parallel>], iteration_bounds = array<i64: 2, 1>, scalar_prefetch = 0 : i64, scratch_operands = 0 : i64, tpu.core_type = #tpu.core_type<tc>, window_params = [{transform_indices = @transform_0, window_bounds = array<i64: 128, 384>}, {transform_indices = @transform_1, window_bounds = array<i64: 384, 512>}, {transform_indices = @transform_2, window_bounds = array<i64: 1, 512>}, {transform_indices = @transform_3, window_bounds = array<i64: 128, 512>}]} {
    %c0 = arith.constant 0 : index
    %c0_0 = arith.constant 0 : index
    %0 = vector.load %arg2[%c0, %c0_0] : memref<128x384xf32, #tpu.memory_space<vmem>>, vector<128x384xf32>
    %1 = arith.truncf %0 : vector<128x384xf32> to vector<128x384xbf16>
    %c0_1 = arith.constant 0 : index
    %c0_2 = arith.constant 0 : index
    %2 = vector.load %arg3[%c0_1, %c0_2] : memref<384x512xbf16, #tpu.memory_space<vmem>>, vector<384x512xbf16>
    %cst = arith.constant dense<0.000000e+00> : vector<128x512xf32>
    %3 = tpu.matmul %1, %2, %cst {dimension_numbers = #tpu.dot_dimension_numbers<[1], [0], [0], [1], [0, 0, 1, 1], [], []>} : vector<128x384xbf16>, vector<384x512xbf16>, vector<128x512xf32> -> vector<128x512xf32>
    %c0_3 = arith.constant 0 : index
    %c0_4 = arith.constant 0 : index
    %4 = vector.load %arg4[%c0_3, %c0_4] : memref<1x512xf32, #tpu.memory_space<vmem>>, vector<1x512xf32>
    %5 = vector.broadcast %4 : vector<1x512xf32> to vector<128x512xf32>
    %6 = arith.addf %3, %5 : vector<128x512xf32>
    %c0_5 = arith.constant 0 : index
    %c0_6 = arith.constant 0 : index
    %7 = vector.load %arg5[%c0_5, %c0_6] : memref<128x512xf32, #tpu.memory_space<vmem>>, vector<128x512xf32>
    tpu.vector_store %arg5[%c0_5, %c0_6], %6 {strides = array<i32>} : memref<128x512xf32, #tpu.memory_space<vmem>>, vector<128x512xf32>,
    return
  }
  func.func @transform_0(%arg0: i32, %arg1: i32) -> (i32, i32) {
    %c0_i32 = arith.constant 0 : i32
    %c0_i32_0 = arith.constant 0 : i32
    return %arg0, %c0_i32 : i32, i32
  }
  func.func @transform_1(%arg0: i32, %arg1: i32) -> (i32, i32) {
    %c0_i32 = arith.constant 0 : i32
    %c0_i32_0 = arith.constant 0 : i32
    return %c0_i32, %arg1 : i32, i32
  }
  func.func @transform_2(%arg0: i32, %arg1: i32) -> (i32, i32) {
    %c0_i32 = arith.constant 0 : i32
    %c0_i32_0 = arith.constant 0 : i32
    return %c0_i32, %arg1 : i32, i32
  }
  func.func @transform_3(%arg0: i32, %arg1: i32) -> (i32, i32) {
    %c0_i32 = arith.constant 0 : i32
    return %arg0, %arg1 : i32, i32
  }
}

</mosaic_0001>

<bundles_post_ra>
// kernel: _linear_forward_pallas.1
= control target key start
LH: loop header
LB: loop body
LE: loop exit
PB: predicated region body
PF: predicated region fallthrough
CT: control target
= control target key end

     0   :  { %s2228_s12 = smov 0   ;;  %s2230_s13 = smov 0   ;;  %s3281_s0 = inlined_call_operand.vmem [shape: f32[256,384], index: 0, kind: input, shape index: {}]   ;;  %s3282_s1 = inlined_call_operand.vmem [shape: bf16[384,512], index: 1, kind: input, shape index: {}]   ;;  %s3283_s2 = inlined_call_operand.vmem [shape: f32[1,512], index: 2, kind: input, shape index: {}]   ;;  %s3284_s3 = inlined_call_operand.vmem [shape: f32[256,512], index: 3, kind: output, shape index: {}]  }
   0x1   :  { %s2232_s14 = smov 0  }
   0x2 LB: > { %s25_s15 = sadd.s32 1, %s2202_s13  ;;  %p1670_p0 = scmp.ge.s32.totalorder %s2206_s14, 1  ;;  %s2206_s14 = sphi %s2232_s14, %s13_s14   ;;  %s2202_s13 = sphi %s2230_s13, %s3286_s13   ;;  %s2198_s12 = sphi %s2228_s12, %s3285_s12  }
   0x3   : > { %p27_p1 = scmp.ge.s32.totalorder %s25_s15, 2  ;;  %p174_p2 = scmp.lt.s32.totalorder %s2206_s14, 3 }
   0x5   : > { %s3288_s15 = smov (%p27_p1, %s25_s15), 0  ;;  %p175_p3 = pnand %p1670_p0, %p174_p2 }
   0x6   : > { %s1671_s7 = sshll.u32 (!%p175_p3), %s2198_s12, 4 }
   0x7   : > { %178 = sbr.rel (%p175_p3) target bundleno = 561 (0x231), region = 32  ;;  %p214_p4 = scmp.lt.s32.totalorder (!%p175_p3), %s1671_s7, 31 }
   0xc   : > { %v1790_v0 = vld [vmem:[%s3282_s1 + $0xe0] sm:$0xf]  ;;  %v2093_v1 = vld [vmem:[%s3282_s1 + $0xec] sm:$0xf0]  ;;  %v2091_v9 = vld [vmem:[%s3282_s1 + $0xe4] sm:$0xf] }
   0xd   : > { %v1918_v2 = vld [vmem:[%s3282_s1 + $0x1e0] sm:$0xf]  ;;  %v1791_v3 = vor.u32 %v2093_v1, %v1790_v0  ;;  %v2125_v4 = vld [vmem:[%s3282_s1 + $0x1ec] sm:$0xf0]  ;;  %v1792_v10 = vld [vmem:[%s3282_s1 + $0xf0] sm:$0xf0] }
   0xe   : > { %v2046_v5 = vld [vmem:[%s3282_s1 + $0x2e0] sm:$0xf]  ;;  %v2157_v6 = vld [vmem:[%s3282_s1 + $0x2ec] sm:$0xf0]  ;;  %v1919_v7 = vor.u32 %v2125_v4, %v1918_v2  ;;  %v1795_v12 = vor.u32 %v2091_v9, %v1792_v10  ;;  %v2087_v20 = vld [vmem:[%s3282_s1 + $0xc4] sm:$0xf] }
   0xf   : > { %v2047_v8 = vor.u32 %v2157_v6, %v2046_v5  ;;  %v1774_v11 = vld [vmem:[%s3282_s1 + $0xc0] sm:$0xf]  ;;  %901 = vmatpush.bf16.msra.mxu0 %v1791_v3  ;;  %v2089_v13 = vld [vmem:[%s3282_s1 + $0xcc] sm:$0xf0]  ;;  %v1776_v22 = vld [vmem:[%s3282_s1 + $0xd0] sm:$0xf0] }
  0x10   : > { %v1902_v14 = vld [vmem:[%s3282_s1 + $0x1c0] sm:$0xf]  ;;  %v2121_v15 = vld [vmem:[%s3282_s1 + $0x1cc] sm:$0xf0]  ;;  %950 = vmatpush.bf16.msra.mxu1 %v1919_v7  ;;  %v1775_v16 = vor.u32 %v2089_v13, %v1774_v11  ;;  %1048 = vmatpush.bf16.msra.mxu3 %v1795_v12  ;;  %v1779_v25 = vor.u32 %v2087_v20, %v1776_v22  ;;  %v2083_v31 = vld [vmem:[%s3282_s1 + $0xa4] sm:$0xf] }
  0x11   : > { %999 = vmatpush.bf16.msra.mxu2 %v2047_v8  ;;  %v1903_v17 = vor.u32 %v2121_v15, %v1902_v14  ;;  %v2030_v18 = vld [vmem:[%s3282_s1 + $0x2c0] sm:$0xf]  ;;  %v2153_v19 = vld [vmem:[%s3282_s1 + $0x2cc] sm:$0xf0]  ;;  %v1760_v32 = vld [vmem:[%s3282_s1 + $0xb0] sm:$0xf0] }
  0x12   : > { %v2031_v21 = vor.u32 %v2153_v19, %v2030_v18  ;;  %v1758_v23 = vld [vmem:[%s3282_s1 + $0xa0] sm:$0xf]  ;;  %v2085_v24 = vld [vmem:[%s3282_s1 + $0xac] sm:$0xf0]  ;;  %v1763_v38 = vor.u32 %v2083_v31, %v1760_v32  ;;  %v2079_v42 = vld [vmem:[%s3282_s1 + $0x84] sm:$0xf] }
  0x13   : > { %v1886_v26 = vld [vmem:[%s3282_s1 + $0x1a0] sm:$0xf]  ;;  %v2117_v27 = vld [vmem:[%s3282_s1 + $0x1ac] sm:$0xf0]  ;;  %902 = vmatpush.bf16.msra.mxu0 %v1775_v16  ;;  %v1759_v29 = vor.u32 %v2085_v24, %v1758_v23  ;;  %v1744_v43 = vld [vmem:[%s3282_s1 + $0x90] sm:$0xf0] }
  0x14   : > { %v2014_v28 = vld [vmem:[%s3282_s1 + $0x2a0] sm:$0xf]  ;;  %v2149_v30 = vld [vmem:[%s3282_s1 + $0x2ac] sm:$0xf0]  ;;  %951 = vmatpush.bf16.msra.mxu1 %v1903_v17  ;;  %v1887_v33 = vor.u32 %v2117_v27, %v1886_v26  ;;  %1049 = vmatpush.bf16.msra.mxu3 %v1779_v25  ;;  %v1747_v50 = vor.u32 %v2079_v42, %v1744_v43  ;;  %v2075_v54 = vld [vmem:[%s3282_s1 + $0x64] sm:$0xf] }
  0x15   : > { %1000 = vmatpush.bf16.msra.mxu2 %v2031_v21  ;;  %v2015_v34 = vor.u32 %v2149_v30, %v2014_v28  ;;  %v1742_v35 = vld [vmem:[%s3282_s1 + $0x80] sm:$0xf]  ;;  %v2081_v36 = vld [vmem:[%s3282_s1 + $0x8c] sm:$0xf0]  ;;  %v1728_v55 = vld [vmem:[%s3282_s1 + $0x70] sm:$0xf0] }
  0x16   : > { %v1870_v37 = vld [vmem:[%s3282_s1 + $0x180] sm:$0xf]  ;;  %v2113_v39 = vld [vmem:[%s3282_s1 + $0x18c] sm:$0xf0]  ;;  %v1743_v44 = vor.u32 %v2081_v36, %v1742_v35  ;;  %v1731_v62 = vor.u32 %v2075_v54, %v1728_v55  ;;  %v2071_v2 = vld [vmem:[%s3282_s1 + $0x44] sm:$0xf] }
  0x17   : > { %v1998_v40 = vld [vmem:[%s3282_s1 + $0x280] sm:$0xf]  ;;  %v2145_v41 = vld [vmem:[%s3282_s1 + $0x28c] sm:$0xf0]  ;;  %903 = vmatpush.bf16.msra.mxu0 %v1759_v29  ;;  %v1871_v45 = vor.u32 %v2113_v39, %v1870_v37  ;;  %v1712_v3 = vld [vmem:[%s3282_s1 + $0x50] sm:$0xf0] }
  0x18   : > { %952 = vmatpush.bf16.msra.mxu1 %v1887_v33  ;;  %v1999_v46 = vor.u32 %v2145_v41, %v1998_v40  ;;  %v1726_v47 = vld [vmem:[%s3282_s1 + $0x60] sm:$0xf]  ;;  %v2077_v48 = vld [vmem:[%s3282_s1 + $0x6c] sm:$0xf0]  ;;  %1050 = vmatpush.bf16.msra.mxu3 %v1763_v38  ;;  %v1715_v12 = vor.u32 %v2071_v2, %v1712_v3  ;;  %v2067_v14 = vld [vmem:[%s3282_s1 + $0x24] sm:$0xf] }
  0x19   : > { %1001 = vmatpush.bf16.msra.mxu2 %v2015_v34  ;;  %v1854_v49 = vld [vmem:[%s3282_s1 + $0x160] sm:$0xf]  ;;  %v2109_v51 = vld [vmem:[%s3282_s1 + $0x16c] sm:$0xf0]  ;;  %v1727_v56 = vor.u32 %v2077_v48, %v1726_v47  ;;  %v1696_v15 = vld [vmem:[%s3282_s1 + $0x30] sm:$0xf0] }
  0x1a   : > { %v1982_v52 = vld [vmem:[%s3282_s1 + $0x260] sm:$0xf]  ;;  %v2141_v53 = vld [vmem:[%s3282_s1 + $0x26c] sm:$0xf0]  ;;  %v1855_v57 = vor.u32 %v2109_v51, %v1854_v49  ;;  %s3290_s7 = smov (!%p214_p4, %s1671_s7), 31  ;;  %v1699_v25 = vor.u32 %v2067_v14, %v1696_v15 }
  0x1b   : > { %904 = vmatpush.bf16.msra.mxu0 %v1743_v44  ;;  %v1983_v58 = vor.u32 %v2141_v53, %v1982_v52  ;;  %v1710_v59 = vld [vmem:[%s3282_s1 + $0x40] sm:$0xf]  ;;  %v2073_v60 = vld [vmem:[%s3282_s1 + $0x4c] sm:$0xf0]  ;;  %v2063_v26 = vld [vmem:[%s3282_s1 + $0x4] sm:$0xf] }
  0x1c   : > { %953 = vmatpush.bf16.msra.mxu1 %v1871_v45  ;;  %v1838_v61 = vld [vmem:[%s3282_s1 + $0x140] sm:$0xf]  ;;  %1051 = vmatpush.bf16.msra.mxu3 %v1747_v50  ;;  %v2105_v63 = vld [vmem:[%s3282_s1 + $0x14c] sm:$0xf0]  ;;  %v1711_v4 = vor.u32 %v2073_v60, %v1710_v59  ;;  %v1680_v27 = vld [vmem:[%s3282_s1 + $0x10] sm:$0xf0] }
  0x1d   : > { %1002 = vmatpush.bf16.msra.mxu2 %v1999_v46  ;;  %v1966_v0 = vld [vmem:[%s3282_s1 + $0x240] sm:$0xf]  ;;  %v2137_v1 = vld [vmem:[%s3282_s1 + $0x24c] sm:$0xf0]  ;;  %v1839_v7 = vor.u32 %v2105_v63, %v1838_v61  ;;  %v1798_v28 = vld [vmem:[%s3282_s1 + $0xe8] sm:$0xf]  ;;  %v1683_v41 = vor.u32 %v2063_v26, %v1680_v27 }
  0x1e   : > { %v1694_v5 = vld [vmem:[%s3282_s1 + $0x20] sm:$0xf]  ;;  %v2069_v6 = vld [vmem:[%s3282_s1 + $0x2c] sm:$0xf0]  ;;  %v1967_v8 = vor.u32 %v2137_v1, %v1966_v0  ;;  %s2159_s4 = smul.u32 24, %s3290_s7  ;;  %s2062_s17 = sshll.u32 %s3290_s7, 5 }
  0x1f   : > { %905 = vmatpush.bf16.msra.mxu0 %v1727_v56  ;;  %v1822_v9 = vld [vmem:[%s3282_s1 + $0x120] sm:$0xf]  ;;  %v2101_v10 = vld [vmem:[%s3282_s1 + $0x12c] sm:$0xf0]  ;;  %v1695_v17 = vor.u32 %v2069_v6, %v1694_v5  ;;  %v2094_v29 = vld [vmem:[%s3282_s1 + $0xf4] sm:$0xf0]  ;;  %s2846_s26 = scalar_lea.vmem %s3284_s3, %s2062_s17 }
  0x20   : > { %954 = vmatpush.bf16.msra.mxu1 %v1855_v57  ;;  %v1950_v11 = vld [vmem:[%s3282_s1 + $0x220] sm:$0xf]  ;;  %1052 = vmatpush.bf16.msra.mxu3 %v1731_v62  ;;  %v2133_v13 = vld [vmem:[%s3282_s1 + $0x22c] sm:$0xf0]  ;;  %v1823_v21 = vor.u32 %v2101_v10, %v1822_v9  ;;  %v1926_v30 = vld [vmem:[%s3282_s1 + $0x1e8] sm:$0xf]  ;;  %s2465_s21 = scalar_lea.vmem %s3281_s0, %s2159_s4  ;;  %v1799_v45 = vor.u32 %v2094_v29, %v1798_v28 }
  0x21   : > { %1003 = vmatpush.bf16.msra.mxu2 %v1983_v58  ;;  %v1678_v16 = vld [vmem:[%s3282_s1] sm:$0xf]  ;;  %v2065_v18 = vld [vmem:[%s3282_s1 + $0xc] sm:$0xf0]  ;;  %v1951_v22 = vor.u32 %v2133_v13, %v1950_v11  ;;  %v2126_v32 = vld [vmem:[%s3282_s1 + $0x1f4] sm:$0xf0] }
  0x22   : > { %v1806_v19 = vld [vmem:[%s3282_s1 + $0x100] sm:$0xf]  ;;  %v2097_v20 = vld [vmem:[%s3282_s1 + $0x10c] sm:$0xf0]  ;;  %v1679_v31 = vor.u32 %v2065_v18, %v1678_v16  ;;  %v2155_v33 = vld [vmem:[%s3282_s1 + $0x2e4] sm:$0xf]  ;;  %v1927_v50 = vor.u32 %v2126_v32, %v1926_v30 }
  0x23   : > { %906 = vmatpush.bf16.msra.mxu0 %v1711_v4  ;;  %v1934_v23 = vld [vmem:[%s3282_s1 + $0x200] sm:$0xf]  ;;  %v2129_v24 = vld [vmem:[%s3282_s1 + $0x20c] sm:$0xf0]  ;;  %v2048_v34 = vld [vmem:[%s3282_s1 + $0x2f0] sm:$0xf0]  ;;  %v1807_v35 = vor.u32 %v2097_v20, %v1806_v19 }
  0x24   : > { %955 = vmatpush.bf16.msra.mxu1 %v1839_v7  ;;  %1053 = vmatpush.bf16.msra.mxu3 %v1715_v12  ;;  %v1935_v36 = vor.u32 %v2129_v24, %v1934_v23  ;;  %v2123_v37 = vld [vmem:[%s3282_s1 + $0x1e4] sm:$0xf]  ;;  %v1920_v38 = vld [vmem:[%s3282_s1 + $0x1f0] sm:$0xf0]  ;;  %v1782_v39 = vld [vmem:[%s3282_s1 + $0xc8] sm:$0xf]  ;;  %v2051_v55 = vor.u32 %v2155_v33, %v2048_v34 }
  0x25   : > { %1004 = vmatpush.bf16.msra.mxu2 %v1967_v8  ;;  %v2090_v40 = vld [vmem:[%s3282_s1 + $0xd4] sm:$0xf0]  ;;  %v243_v42 = vld [vmem:[%s2465_s21] sm:$0xff]  ;;  %v244_v44 = vld [vmem:[%s2465_s21 + $0x8] sm:$0xff]  ;;  %v1923_v56 = vor.u32 %v2123_v37, %v1920_v38 }
  0x26   : > { %v246_v43 = vld [vmem:[%s2465_s21 + $0x18] sm:$0xff]  ;;  %v247_v47 = vld [vmem:[%s2465_s21 + $0x20] sm:$0xff]  ;;  %v245_v48 = vld [vmem:[%s2465_s21 + $0x10] sm:$0xff]  ;;  %v1783_v57 = vor.u32 %v2090_v40, %v1782_v39 }
  0x27   : > { %907 = vmatpush.bf16.msra.mxu0 %v1695_v17  ;;  %v2482_v46 = vpack.c.bf16 %v246_v43, %v243_v42  ;;  %v248_v49 = vld [vmem:[%s2465_s21 + $0x28] sm:$0xff]  ;;  %v2487_v51 = vpack.c.bf16 %v247_v47, %v244_v44  ;;  %v2122_v54 = vld [vmem:[%s3282_s1 + $0x1d4] sm:$0xf0]  ;;  %v2151_v58 = vld [vmem:[%s3282_s1 + $0x2c4] sm:$0xf] }
  0x28   : > { %956 = vmatpush.bf16.msra.mxu1 %v1823_v21  ;;  %1054 = vmatpush.bf16.msra.mxu3 %v1699_v25  ;;  %v2489_v52 = vpack.c.bf16 %v248_v49, %v245_v48  ;;  %v1910_v53 = vld [vmem:[%s3282_s1 + $0x1c8] sm:$0xf]  ;;  %v2032_v59 = vld [vmem:[%s3282_s1 + $0x2d0] sm:$0xf0]  ;;  %v2119_v61 = vld [vmem:[%s3282_s1 + $0x1c4] sm:$0xf] }
  0x29   : > { %1005 = vmatpush.bf16.msra.mxu2 %v1951_v22  ;;  %v1911_v60 = vor.u32 %v2122_v54, %v1910_v53  ;;  %v1904_v62 = vld [vmem:[%s3282_s1 + $0x1d0] sm:$0xf0]  ;;  %v2035_v63 = vor.u32 %v2151_v58, %v2032_v59  ;;  %v1766_v0 = vld [vmem:[%s3282_s1 + $0xa8] sm:$0xf]  ;;  %v2086_v1 = vld [vmem:[%s3282_s1 + $0xb4] sm:$0xf0] }
  0x2a   : > { %v1894_v2 = vld [vmem:[%s3282_s1 + $0x1a8] sm:$0xf]  ;;  %v1907_v3 = vor.u32 %v2119_v61, %v1904_v62  ;;  %v1767_v4 = vor.u32 %v2086_v1, %v1766_v0  ;;  %v2118_v5 = vld [vmem:[%s3282_s1 + $0x1b4] sm:$0xf0]  ;;  %v2147_v6 = vld [vmem:[%s3282_s1 + $0x2a4] sm:$0xf] }
  0x2b   : > { %908 = vmatpush.bf16.msra.mxu0 %v1679_v31  ;;  %v2016_v7 = vld [vmem:[%s3282_s1 + $0x2b0] sm:$0xf0]  ;;  %v1895_v8 = vor.u32 %v2118_v5, %v1894_v2  ;;  %v2115_v9 = vld [vmem:[%s3282_s1 + $0x1a4] sm:$0xf]  ;;  %v252_v14 = vld [vmem:[%s2465_s21 + $0x48] sm:$0xff] }
  0x2c   : > { %957 = vmatpush.bf16.msra.mxu1 %v1807_v35  ;;  %1055 = vmatpush.bf16.msra.mxu3 %v1683_v41  ;;  %v1888_v10 = vld [vmem:[%s3282_s1 + $0x1b0] sm:$0xf0]  ;;  %v2019_v11 = vor.u32 %v2147_v6, %v2016_v7  ;;  %v250_v15 = vld [vmem:[%s2465_s21 + $0x38] sm:$0xff]  ;;  %v251_v17 = vld [vmem:[%s2465_s21 + $0x40] sm:$0xff] }
  0x2d   : > { %1006 = vmatpush.bf16.msra.mxu2 %v1935_v36  ;;  %v1891_v12 = vor.u32 %v2115_v9, %v1888_v10  ;;  %v249_v13 = vld [vmem:[%s2465_s21 + $0x30] sm:$0xff]  ;;  %v254_v18 = vld [vmem:[%s2465_s21 + $0x58] sm:$0xff]  ;;  %v1750_v22 = vld [vmem:[%s3282_s1 + $0x88] sm:$0xf] }
  0x2e   : > { %909 = vmatmul.bf16.vlgmr.msra.gmra.mxu0 %v2482_v46  ;;  %v253_v16 = vld [vmem:[%s2465_s21 + $0x50] sm:$0xff]  ;;  %v2543_v19 = vpack.c.bf16 %v252_v14, %v249_v13  ;;  %v2547_v21 = vpack.c.bf16 %v254_v18, %v251_v17  ;;  %v2082_v23 = vld [vmem:[%s3282_s1 + $0x94] sm:$0xf0]  ;;  %v1878_v24 = vld [vmem:[%s3282_s1 + $0x188] sm:$0xf] }
  0x2f   : > { %958 = vmatmul.bf16.vlgmr.msra.gmra.mxu1 %v2487_v51  ;;  %1056 = vmatmul.bf16.vlgmr.msra.gmra.mxu3 %v2482_v46  ;;  %v2545_v20 = vpack.c.bf16 %v253_v16, %v250_v15  ;;  %v1751_v25 = vor.u32 %v2082_v23, %v1750_v22  ;;  %v2114_v26 = vld [vmem:[%s3282_s1 + $0x194] sm:$0xf0]  ;;  %v2143_v27 = vld [vmem:[%s3282_s1 + $0x284] sm:$0xf]  ;;  %v2000_v28 = vld [vmem:[%s3282_s1 + $0x290] sm:$0xf0] }
  0x30   : > { %1244 = vmatpush.bf16.msrb.mxu3 %v1927_v50  ;;  %1007 = vmatmul.bf16.vlgmr.msra.gmra.mxu2 %v2489_v52  ;;  %v1879_v29 = vor.u32 %v2114_v26, %v1878_v24  ;;  %v2003_v30 = vor.u32 %v2143_v27, %v2000_v28  ;;  %v2111_v31 = vld [vmem:[%s3282_s1 + $0x184] sm:$0xf]  ;;  %v1872_v32 = vld [vmem:[%s3282_s1 + $0x190] sm:$0xf0]  ;;  %v258_v35 = vld [vmem:[%s2465_s21 + $0x78] sm:$0xff] }
  0x31   : > { %1195 = vmatpush.bf16.msrb.mxu2 %v1799_v45  ;;  %1146 = vmatpush.bf16.msrb.mxu1 %v2051_v55  ;;  %v1875_v33 = vor.u32 %v2111_v31, %v1872_v32  ;;  %v255_v34 = vld [vmem:[%s2465_s21 + $0x60] sm:$0xff]  ;;  %v256_v36 = vld [vmem:[%s2465_s21 + $0x68] sm:$0xff]  ;;  %v257_v38 = vld [vmem:[%s2465_s21 + $0x70] sm:$0xff] }
  0x32   : > { %1097 = vmatpush.bf16.msrb.mxu0 %v1923_v56  ;;  %v259_v37 = vld [vmem:[%s2465_s21 + $0x80] sm:$0xff]  ;;  %v260_v39 = vld [vmem:[%s2465_s21 + $0x88] sm:$0xff]  ;;  %v2583_v40 = vpack.c.bf16 %v258_v35, %v255_v34  ;;  %v2078_v44 = vld [vmem:[%s3282_s1 + $0x74] sm:$0xf0] }
  0x33   : > { %v2585_v41 = vpack.c.bf16 %v259_v37, %v256_v36  ;;  %v2587_v42 = vpack.c.bf16 %v260_v39, %v257_v38  ;;  %v1734_v43 = vld [vmem:[%s3282_s1 + $0x68] sm:$0xf]  ;;  %v2110_v48 = vld [vmem:[%s3282_s1 + $0x174] sm:$0xf0]  ;;  %v2139_v49 = vld [vmem:[%s3282_s1 + $0x264] sm:$0xf] }
  0x34   : > { %1245 = vmatpush.bf16.msrb.mxu3 %v1911_v60  ;;  %v1862_v45 = vld [vmem:[%s3282_s1 + $0x168] sm:$0xf]  ;;  %v1735_v47 = vor.u32 %v2078_v44, %v1734_v43  ;;  %v1984_v50 = vld [vmem:[%s3282_s1 + $0x270] sm:$0xf0]  ;;  %v2107_v55 = vld [vmem:[%s3282_s1 + $0x164] sm:$0xf] }
  0x35   : > { %1196 = vmatpush.bf16.msrb.mxu2 %v1783_v57  ;;  %1147 = vmatpush.bf16.msrb.mxu1 %v2035_v63  ;;  %v1863_v53 = vor.u32 %v2110_v48, %v1862_v45  ;;  %v1987_v54 = vor.u32 %v2139_v49, %v1984_v50  ;;  %v1856_v56 = vld [vmem:[%s3282_s1 + $0x170] sm:$0xf0]  ;;  %v264_v59 = vld [vmem:[%s2465_s21 + $0xa8] sm:$0xff]  ;;  %v262_v60 = vld [vmem:[%s2465_s21 + $0x98] sm:$0xff] }
  0x36   : > { %1098 = vmatpush.bf16.msrb.mxu0 %v1907_v3  ;;  %v1859_v57 = vor.u32 %v2107_v55, %v1856_v56  ;;  %v261_v58 = vld [vmem:[%s2465_s21 + $0x90] sm:$0xff]  ;;  %v263_v62 = vld [vmem:[%s2465_s21 + $0xa0] sm:$0xff]  ;;  %v266_v63 = vld [vmem:[%s2465_s21 + $0xb8] sm:$0xff] }
  0x37   : > { %v265_v61 = vld [vmem:[%s2465_s21 + $0xb0] sm:$0xff]  ;;  %v2623_v0 = vpack.c.bf16 %v264_v59, %v261_v58  ;;  %v2627_v2 = vpack.c.bf16 %v266_v63, %v263_v62  ;;  %v1718_v3 = vld [vmem:[%s3282_s1 + $0x48] sm:$0xf]  ;;  %v2106_v7 = vld [vmem:[%s3282_s1 + $0x154] sm:$0xf0] }
  0x38   : > { %1246 = vmatpush.bf16.msrb.mxu3 %v1895_v8  ;;  %v2625_v1 = vpack.c.bf16 %v265_v61, %v262_v60  ;;  %v1846_v5 = vld [vmem:[%s3282_s1 + $0x148] sm:$0xf]  ;;  %v2135_v8 = vld [vmem:[%s3282_s1 + $0x244] sm:$0xf]  ;;  %v1968_v9 = vld [vmem:[%s3282_s1 + $0x250] sm:$0xf0] }
  0x39   : > { %1197 = vmatpush.bf16.msrb.mxu2 %v1767_v4  ;;  %1148 = vmatpush.bf16.msrb.mxu1 %v2019_v11  ;;  %v2074_v4 = vld [vmem:[%s3282_s1 + $0x54] sm:$0xf0]  ;;  %v1847_v10 = vor.u32 %v2106_v7, %v1846_v5  ;;  %v1971_v11 = vor.u32 %v2135_v8, %v1968_v9  ;;  %v1840_v13 = vld [vmem:[%s3282_s1 + $0x150] sm:$0xf0]  ;;  %v267_v15 = vld [vmem:[%s2465_s21 + $0xc0] sm:$0xff] }
  0x3a   : > { %1099 = vmatpush.bf16.msrb.mxu0 %v1891_v12  ;;  %v1719_v6 = vor.u32 %v2074_v4, %v1718_v3  ;;  %v2103_v12 = vld [vmem:[%s3282_s1 + $0x144] sm:$0xf]  ;;  %v270_v16 = vld [vmem:[%s2465_s21 + $0xd8] sm:$0xff]  ;;  %v268_v17 = vld [vmem:[%s2465_s21 + $0xc8] sm:$0xff] }
  0x3b   : > { %v1843_v14 = vor.u32 %v2103_v12, %v1840_v13  ;;  %v271_v18 = vld [vmem:[%s2465_s21 + $0xe0] sm:$0xff]  ;;  %v269_v22 = vld [vmem:[%s2465_s21 + $0xd0] sm:$0xff]  ;;  %v272_v23 = vld [vmem:[%s2465_s21 + $0xe8] sm:$0xff]  ;;  %v2663_v24 = vpack.c.bf16 %v270_v16, %v267_v15 }
  0x3c   : > { %1247 = vmatpush.bf16.msrb.mxu3 %v1879_v29  ;;  %v2667_v26 = vpack.c.bf16 %v272_v23, %v269_v22  ;;  %v1702_v27 = vld [vmem:[%s3282_s1 + $0x28] sm:$0xf]  ;;  %v2070_v28 = vld [vmem:[%s3282_s1 + $0x34] sm:$0xf0]  ;;  %v2131_v32 = vld [vmem:[%s3282_s1 + $0x224] sm:$0xf] }
  0x3d   : > { %1198 = vmatpush.bf16.msrb.mxu2 %v1751_v25  ;;  %1149 = vmatpush.bf16.msrb.mxu1 %v2003_v30  ;;  %v2665_v25 = vpack.c.bf16 %v271_v18, %v268_v17  ;;  %v1830_v29 = vld [vmem:[%s3282_s1 + $0x128] sm:$0xf]  ;;  %v1703_v30 = vor.u32 %v2070_v28, %v1702_v27  ;;  %v2102_v31 = vld [vmem:[%s3282_s1 + $0x134] sm:$0xf0]  ;;  %v2099_v36 = vld [vmem:[%s3282_s1 + $0x124] sm:$0xf] }
  0x3e   : > { %914 = vmatmul.bf16.gmra.mxu0 %v2543_v19  ;;  %v1831_v34 = vor.u32 %v2102_v31, %v1830_v29  ;;  %v1824_v37 = vld [vmem:[%s3282_s1 + $0x130] sm:$0xf0]  ;;  %v276_v43 = vld [vmem:[%s2465_s21 + $0x108] sm:$0xff]  ;;  %v274_v44 = vld [vmem:[%s2465_s21 + $0xf8] sm:$0xff] }
  0x3f   : > { %963 = vmatmul.bf16.gmra.mxu1 %v2545_v20  ;;  %1061 = vmatmul.bf16.gmra.mxu3 %v2543_v19  ;;  %v1827_v38 = vor.u32 %v2099_v36, %v1824_v37  ;;  %v273_v39 = vld [vmem:[%s2465_s21 + $0xf0] sm:$0xff]  ;;  %v278_v48 = vld [vmem:[%s2465_s21 + $0x118] sm:$0xff]  ;;  %v1814_v56 = vld [vmem:[%s3282_s1 + $0x108] sm:$0xf] }
  0x40   : > { %1012 = vmatmul.bf16.gmra.mxu2 %v2547_v21  ;;  %1100 = vmatpush.bf16.msrb.mxu0 %v1875_v33  ;;  %v1952_v33 = vld [vmem:[%s3282_s1 + $0x230] sm:$0xf0]  ;;  %v2703_v49 = vpack.c.bf16 %v276_v43, %v273_v39  ;;  %v2066_v55 = vld [vmem:[%s3282_s1 + $0x14] sm:$0xf0]  ;;  %v2127_v59 = vld [vmem:[%s3282_s1 + $0x204] sm:$0xf] }
  0x41   : > { %1199 = vmatpush.bf16.msrb.mxu2 %v1735_v47  ;;  %1248 = vmatpush.bf16.msrb.mxu3 %v1863_v53  ;;  %v1955_v35 = vor.u32 %v2131_v32, %v1952_v33  ;;  %v277_v45 = vld [vmem:[%s2465_s21 + $0x110] sm:$0xff]  ;;  %v275_v47 = vld [vmem:[%s2465_s21 + $0x100] sm:$0xff]  ;;  %v2098_v58 = vld [vmem:[%s3282_s1 + $0x114] sm:$0xf0] }
  0x42   : > { %1150 = vmatpush.bf16.msrb.mxu1 %v1987_v54  ;;  %v2705_v50 = vpack.c.bf16 %v277_v45, %v274_v44  ;;  %v2707_v53 = vpack.c.bf16 %v278_v48, %v275_v47  ;;  %v1686_v54 = vld [vmem:[%s3282_s1 + $0x8] sm:$0xf]  ;;  %v1936_v60 = vld [vmem:[%s3282_s1 + $0x210] sm:$0xf0]  ;;  %v1815_v61 = vor.u32 %v2098_v58, %v1814_v56  ;;  %v2095_v63 = vld [vmem:[%s3282_s1 + $0x104] sm:$0xf] }
  0x43   : > { %v1939_v62 = vor.u32 %v2127_v59, %v1936_v60  ;;  %v1808_v3 = vld [vmem:[%s3282_s1 + $0x110] sm:$0xf0]  ;;  %v279_v5 = vld [vmem:[%s2465_s21 + $0x120] sm:$0xff]  ;;  %v280_v7 = vld [vmem:[%s2465_s21 + $0x128] sm:$0xff] }
  0x44   : > { %1101 = vmatpush.bf16.msrb.mxu0 %v1859_v57  ;;  %v1687_v57 = vor.u32 %v2066_v55, %v1686_v54  ;;  %v1811_v4 = vor.u32 %v2095_v63, %v1808_v3  ;;  %v283_v8 = vld [vmem:[%s2465_s21 + $0x140] sm:$0xff]  ;;  %v281_v9 = vld [vmem:[%s2465_s21 + $0x130] sm:$0xff]  ;;  %v1928_v15 = vld [vmem:[%s3282_s1 + $0x1f8] sm:$0xf0] }
  0x45   : > { %1200 = vmatpush.bf16.msrb.mxu2 %v1719_v6  ;;  %1249 = vmatpush.bf16.msrb.mxu3 %v1847_v10  ;;  %v282_v6 = vld [vmem:[%s2465_s21 + $0x138] sm:$0xff]  ;;  %v284_v10 = vld [vmem:[%s2465_s21 + $0x148] sm:$0xff]  ;;  %v2745_v12 = vpack.c.bf16 %v283_v8, %v280_v7  ;;  %v285_v31 = vld [vmem:[%s2465_s21 + $0x150] sm:$0xff] }
  0x46   : > { %1151 = vmatpush.bf16.msrb.mxu1 %v1971_v11  ;;  %v2743_v11 = vpack.c.bf16 %v282_v6, %v279_v5  ;;  %v2747_v13 = vpack.c.bf16 %v284_v10, %v281_v9  ;;  %v2156_v16 = vld [vmem:[%s3282_s1 + $0x2ec] sm:$0xf]  ;;  %v2056_v18 = vld [vmem:[%s3282_s1 + $0x2f8] sm:$0xf0]  ;;  %v2054_v29 = vld [vmem:[%s3282_s1 + $0x2e8] sm:$0xf] }
  0x47   : > { %v2059_v22 = vor.u32 %v2156_v16, %v2056_v18  ;;  %v2092_v23 = vld [vmem:[%s3282_s1 + $0xec] sm:$0xf]  ;;  %v1800_v27 = vld [vmem:[%s3282_s1 + $0xf8] sm:$0xf0]  ;;  %v287_v36 = vld [vmem:[%s2465_s21 + $0x160] sm:$0xff] }
  0x48   : > { %1102 = vmatpush.bf16.msrb.mxu0 %v1843_v14  ;;  %v2124_v14 = vld [vmem:[%s3282_s1 + $0x1ec] sm:$0xf]  ;;  %v1803_v28 = vor.u32 %v2092_v23, %v1800_v27  ;;  %v286_v33 = vld [vmem:[%s2465_s21 + $0x158] sm:$0xff]  ;;  %v2808_v56 = vld [vmem:[%s3283_s2] sm:$0xf] }
  0x49   : > { %1201 = vmatpush.bf16.msrb.mxu2 %v1703_v30  ;;  %1250 = vmatpush.bf16.msrb.mxu3 %v1831_v34  ;;  %v1931_v17 = vor.u32 %v2124_v14, %v1928_v15  ;;  %v2158_v30 = vld [vmem:[%s3282_s1 + $0x2f4] sm:$0xf0]  ;;  %v288_v32 = vld [vmem:[%s2465_s21 + $0x168] sm:$0xff]  ;;  %v1912_v45 = vld [vmem:[%s3282_s1 + $0x1d8] sm:$0xf0]  ;;  %v2823_v63 = vperm.slane %v2808_v56, 0 }
  0x4a   : > { %1152 = vmatpush.bf16.msrb.mxu1 %v1955_v35  ;;  %v2055_v34 = vor.u32 %v2158_v30, %v2054_v29  ;;  %v289_v35 = vld [vmem:[%s2465_s21 + $0x170] sm:$0xff]  ;;  %v290_v37 = vld [vmem:[%s2465_s21 + $0x178] sm:$0xff]  ;;  %v2120_v44 = vld [vmem:[%s3282_s1 + $0x1cc] sm:$0xf] }
  0x4b   : > { %v2785_v39 = vpack.c.bf16 %v289_v35, %v286_v33  ;;  %v2787_v43 = vpack.c.bf16 %v290_v37, %v287_v36  ;;  %v2152_v47 = vld [vmem:[%s3282_s1 + $0x2cc] sm:$0xf]  ;;  %v1915_v48 = vor.u32 %v2120_v44, %v1912_v45  ;;  %v2040_v54 = vld [vmem:[%s3282_s1 + $0x2d8] sm:$0xf0]  ;;  %v2038_v60 = vld [vmem:[%s3282_s1 + $0x2c8] sm:$0xf] }
  0x4c   : > { %1103 = vmatpush.bf16.msrb.mxu0 %v1827_v38  ;;  %v2783_v38 = vpack.c.bf16 %v288_v32, %v285_v31  ;;  %v2043_v55 = vor.u32 %v2152_v47, %v2040_v54  ;;  %v1784_v58 = vld [vmem:[%s3282_s1 + $0xd8] sm:$0xf0]  ;;  %v2116_v7 = vld [vmem:[%s3282_s1 + $0x1ac] sm:$0xf]  ;;  %v2022_v31 = vld [vmem:[%s3282_s1 + $0x2a8] sm:$0xf] }
  0x4d   : > { %1202 = vmatpush.bf16.msrb.mxu2 %v1687_v57  ;;  %1251 = vmatpush.bf16.msrb.mxu3 %v1815_v61  ;;  %v2088_v57 = vld [vmem:[%s3282_s1 + $0xcc] sm:$0xf]  ;;  %v2154_v61 = vld [vmem:[%s3282_s1 + $0x2d4] sm:$0xf0]  ;;  %v1896_v8 = vld [vmem:[%s3282_s1 + $0x1b8] sm:$0xf0] }
  0x4e   : > { %919 = vmatmul.bf16.gmra.mxu0 %v2583_v40  ;;  %1153 = vmatpush.bf16.msrb.mxu1 %v1939_v62  ;;  %v1787_v59 = vor.u32 %v2088_v57, %v1784_v58  ;;  %v2039_v62 = vor.u32 %v2154_v61, %v2038_v60  ;;  %v2148_v9 = vld [vmem:[%s3282_s1 + $0x2ac] sm:$0xf]  ;;  %v1899_v10 = vor.u32 %v2116_v7, %v1896_v8  ;;  %v2024_v14 = vld [vmem:[%s3282_s1 + $0x2b8] sm:$0xf0]  ;;  %v2150_v32 = vld [vmem:[%s3282_s1 + $0x2b4] sm:$0xf0] }
  0x4f   : > { %968 = vmatmul.bf16.gmra.mxu1 %v2585_v41  ;;  %1066 = vmatmul.bf16.gmra.mxu3 %v2583_v40  ;;  %v2027_v16 = vor.u32 %v2148_v9, %v2024_v14  ;;  %v1768_v29 = vld [vmem:[%s3282_s1 + $0xb8] sm:$0xf0]  ;;  %v2023_v33 = vor.u32 %v2150_v32, %v2022_v31  ;;  %v2112_v54 = vld [vmem:[%s3282_s1 + $0x18c] sm:$0xf]  ;;  %v2146_v14 = vld [vmem:[%s3282_s1 + $0x294] sm:$0xf0] }
  0x50   : > { %1017 = vmatmul.bf16.gmra.mxu2 %v2587_v42  ;;  %1104 = vmatpush.bf16.msrb.mxu0 %v1811_v4  ;;  %v2144_v57 = vld [vmem:[%s3282_s1 + $0x28c] sm:$0xf]  ;;  %v1752_v8 = vld [vmem:[%s3282_s1 + $0x98] sm:$0xf0] }
  0x51   : > { %1391 = vmatpush.bf16.msra.mxu2 %v1931_v17  ;;  %1440 = vmatpush.bf16.msra.mxu3 %v2059_v22  ;;  %v2080_v7 = vld [vmem:[%s3282_s1 + $0x8c] sm:$0xf]  ;;  %v1864_v32 = vld [vmem:[%s3282_s1 + $0x178] sm:$0xf0] }
  0x52   : > { %1342 = vmatpush.bf16.msra.mxu1 %v1803_v28  ;;  %v2084_v28 = vld [vmem:[%s3282_s1 + $0xac] sm:$0xf]  ;;  %v1755_v9 = vor.u32 %v2080_v7, %v1752_v8 }
  0x53   : > { %v1771_v30 = vor.u32 %v2084_v28, %v1768_v29  ;;  %v2108_v31 = vld [vmem:[%s3282_s1 + $0x16c] sm:$0xf] }
  0x54   : > { %1293 = vmatpush.bf16.msra.mxu0 %v2055_v34 }
  0x55   : > { %1392 = vmatpush.bf16.msra.mxu2 %v1915_v48  ;;  %1441 = vmatpush.bf16.msra.mxu3 %v2043_v55  ;;  %v1880_v55 = vld [vmem:[%s3282_s1 + $0x198] sm:$0xf0] }
  0x56   : > { %1343 = vmatpush.bf16.msra.mxu1 %v1787_v59  ;;  %v1883_v58 = vor.u32 %v2112_v54, %v1880_v55  ;;  %v2008_v59 = vld [vmem:[%s3282_s1 + $0x298] sm:$0xf0] }
  0x57   : > { %v2011_v61 = vor.u32 %v2144_v57, %v2008_v59  ;;  %v2076_v57 = vld [vmem:[%s3282_s1 + $0x6c] sm:$0xf] }
  0x58   : > { %1294 = vmatpush.bf16.msra.mxu0 %v2039_v62 }
  0x59   : > { %1393 = vmatpush.bf16.msra.mxu2 %v1899_v10  ;;  %1442 = vmatpush.bf16.msra.mxu3 %v2027_v16  ;;  %v2006_v10 = vld [vmem:[%s3282_s1 + $0x288] sm:$0xf] }
  0x5a   : > { %1344 = vmatpush.bf16.msra.mxu1 %v1771_v30 }
  0x5c   : > { %1295 = vmatpush.bf16.msra.mxu0 %v2023_v33  ;;  %v2140_v33 = vld [vmem:[%s3282_s1 + $0x26c] sm:$0xf] }
  0x5d   : > { %1394 = vmatpush.bf16.msra.mxu2 %v1883_v58  ;;  %1443 = vmatpush.bf16.msra.mxu3 %v2011_v61  ;;  %v1736_v58 = vld [vmem:[%s3282_s1 + $0x78] sm:$0xf0]  ;;  %v2142_v61 = vld [vmem:[%s3282_s1 + $0x274] sm:$0xf0] }
  0x5e   : > { %924 = vmatmul.bf16.gmra.mxu0 %v2623_v0  ;;  %1345 = vmatpush.bf16.msra.mxu1 %v1755_v9  ;;  %v1739_v59 = vor.u32 %v2076_v57, %v1736_v58 }
  0x5f   : > { %973 = vmatmul.bf16.gmra.mxu1 %v2625_v1  ;;  %1071 = vmatmul.bf16.gmra.mxu3 %v2623_v0 }
  0x60   : > { %1022 = vmatmul.bf16.gmra.mxu2 %v2627_v2 }
  0x62   : > { %1346 = vmatpush.bf16.msra.mxu1 %v1739_v59 }
  0x6e   : > { %929 = vmatmul.bf16.gmra.mxu0 %v2663_v24 }
  0x6f   : > { %978 = vmatmul.bf16.gmra.mxu1 %v2665_v25  ;;  %1076 = vmatmul.bf16.gmra.mxu3 %v2663_v24 }
  0x70   : > { %1027 = vmatmul.bf16.gmra.mxu2 %v2667_v26 }
  0x7e   : > { %934 = vmatmul.bf16.gmra.mxu0 %v2703_v49 }
  0x7f   : > { %983 = vmatmul.bf16.gmra.mxu1 %v2705_v50  ;;  %1081 = vmatmul.bf16.gmra.mxu3 %v2703_v49 }
  0x80   : > { %1032 = vmatmul.bf16.gmra.mxu2 %v2707_v53 }
  0x8e   : > { %939 = vmatmul.bf16.gmra.mxu0 %v2743_v11 }
  0x8f   : > { %988 = vmatmul.bf16.gmra.mxu1 %v2745_v12  ;;  %1086 = vmatmul.bf16.gmra.mxu3 %v2743_v11 }
  0x90   : > { %1037 = vmatmul.bf16.gmra.mxu2 %v2747_v13 }
  0x9e   : > { %944 = vmatmul.bf16.gmra.mxu0 %v2783_v38 }
  0x9f   : > { %993 = vmatmul.bf16.gmra.mxu1 %v2785_v39  ;;  %1091 = vmatmul.bf16.gmra.mxu3 %v2783_v38 }
  0xa0   : > { %1042 = vmatmul.bf16.gmra.mxu2 %v2787_v43 }
  0xab   : > { %v910_v3 = vpop.f32.mrf.mxu0 }
  0xac   : > { %v911_v4 = vadd.f32 %v910_v3, %v2823_v63  ;;  %v959_v5 = vpop.f32.mrf.mxu1 }
  0xae   : > { %1105 = vmatmul.bf16.vlgmr.msrb.gmra.mxu0 %v2487_v51  ;;  %v960_v6 = vadd.f32 %v959_v5, %v911_v4 }
  0xaf   : > { %1154 = vmatmul.bf16.vlgmr.msrb.gmra.mxu1 %v2489_v52  ;;  %1252 = vmatmul.bf16.vlgmr.msrb.gmra.mxu3 %v2487_v51 }
  0xb0   : > { %1203 = vmatmul.bf16.vlgmr.msrb.gmra.mxu2 %v2482_v46 }
  0xb2   : > { %v2848_v18 = vpop.f32.mrf.mxu3 }
  0xb3   : > { %v1008_v15 = vpop.f32.mrf.mxu2  ;;  %v912_v22 = vpop.f32.mrf.mxu0 }
  0xb4   : > { %v1009_v17 = vadd.f32 %v1008_v15, %v960_v6  ;;  %v961_v23 = vpop.f32.mrf.mxu1  ;;  %v913_v27 = vadd.f32 %v912_v22, %v2823_v63  ;;  %v2007_v15 = vor.u32 %v2146_v14, %v2006_v10 }
  0xb6   : > { %1489 = vst [vmem:[%s2846_s26] sm:$0xff] %v1009_v17  ;;  %v962_v34 = vadd.f32 %v961_v23, %v913_v27  ;;  %1296 = vmatpush.bf16.msra.mxu0 %v2007_v15  ;;  %v2104_v15 = vld [vmem:[%s3282_s1 + $0x14c] sm:$0xf] }
  0xba   : > { %v2864_v37 = vpop.f32.mrf.mxu3 }
  0xbb   : > { %v1010_v35 = vpop.f32.mrf.mxu2  ;;  %v915_v44 = vpop.f32.mrf.mxu0 }
  0xbc   : > { %v1011_v36 = vadd.f32 %v1010_v35, %v962_v34  ;;  %v916_v45 = vadd.f32 %v915_v44, %v2823_v63  ;;  %v964_v47 = vpop.f32.mrf.mxu1  ;;  %v1867_v34 = vor.u32 %v2108_v31, %v1864_v32  ;;  %v1992_v35 = vld [vmem:[%s3282_s1 + $0x278] sm:$0xf0] }
  0xbd   : > { %v1995_v44 = vor.u32 %v2140_v33, %v1992_v35  ;;  %v2072_v35 = vld [vmem:[%s3282_s1 + $0x4c] sm:$0xf] }
  0xbe   : > { %1493 = vst [vmem:[%s2846_s26 + $0x20] sm:$0xff] %v1011_v36  ;;  %1110 = vmatmul.bf16.gmra.mxu0 %v2545_v20  ;;  %v965_v48 = vadd.f32 %v964_v47, %v916_v45  ;;  %1395 = vmatpush.bf16.msra.mxu2 %v1867_v34 }
  0xbf   : > { %1159 = vmatmul.bf16.gmra.mxu1 %v2547_v21  ;;  %1257 = vmatmul.bf16.gmra.mxu3 %v2545_v20 }
  0xc0   : > { %1208 = vmatmul.bf16.gmra.mxu2 %v2543_v19  ;;  %1444 = vmatpush.bf16.msra.mxu3 %v1995_v44 }
  0xc2   : > { %v2884_v3 = vpop.f32.mrf.mxu3 }
  0xc3   : > { %v1013_v60 = vpop.f32.mrf.mxu2  ;;  %v917_v4 = vpop.f32.mrf.mxu0 }
  0xc4   : > { %v1014_v62 = vadd.f32 %v1013_v60, %v965_v48  ;;  %v966_v5 = vpop.f32.mrf.mxu1  ;;  %v918_v6 = vadd.f32 %v917_v4, %v2823_v63  ;;  %v1990_v60 = vld [vmem:[%s3282_s1 + $0x268] sm:$0xf] }
  0xc6   : > { %1497 = vst [vmem:[%s2846_s26 + $0x40] sm:$0xff] %v1014_v62  ;;  %v967_v16 = vadd.f32 %v966_v5, %v918_v6  ;;  %v1991_v62 = vor.u32 %v2142_v61, %v1990_v60 }
  0xc8   : > { %1297 = vmatpush.bf16.msra.mxu0 %v1991_v62 }
  0xca   : > { %v2900_v23 = vpop.f32.mrf.mxu3 }
  0xcb   : > { %v1015_v17 = vpop.f32.mrf.mxu2  ;;  %v920_v27 = vpop.f32.mrf.mxu0 }
  0xcc   : > { %v1016_v22 = vadd.f32 %v1015_v17, %v967_v16  ;;  %v921_v28 = vadd.f32 %v920_v27, %v2823_v63  ;;  %v969_v29 = vpop.f32.mrf.mxu1  ;;  %v1848_v16 = vld [vmem:[%s3282_s1 + $0x158] sm:$0xf0]  ;;  %v2136_v17 = vld [vmem:[%s3282_s1 + $0x24c] sm:$0xf] }
  0xcd   : > { %v1976_v27 = vld [vmem:[%s3282_s1 + $0x258] sm:$0xf0] }
  0xce   : > { %1501 = vst [vmem:[%s2846_s26 + $0x60] sm:$0xff] %v1016_v22  ;;  %1115 = vmatmul.bf16.gmra.mxu0 %v2585_v41  ;;  %v970_v30 = vadd.f32 %v969_v29, %v921_v28  ;;  %v1851_v22 = vor.u32 %v2104_v15, %v1848_v16  ;;  %v1979_v29 = vor.u32 %v2136_v17, %v1976_v27 }
  0xcf   : > { %1164 = vmatmul.bf16.gmra.mxu1 %v2587_v42  ;;  %1262 = vmatmul.bf16.gmra.mxu3 %v2585_v41 }
  0xd0   : > { %1213 = vmatmul.bf16.gmra.mxu2 %v2583_v40  ;;  %1445 = vmatpush.bf16.msra.mxu3 %v1979_v29  ;;  %v2068_v29 = vld [vmem:[%s3282_s1 + $0x2c] sm:$0xf] }
  0xd1   : > { %1396 = vmatpush.bf16.msra.mxu2 %v1851_v22 }
  0xd2   : > { %v2920_v47 = vpop.f32.mrf.mxu3 }
  0xd3   : > { %v1018_v36 = vpop.f32.mrf.mxu2  ;;  %v922_v48 = vpop.f32.mrf.mxu0 }
  0xd4   : > { %v1019_v45 = vadd.f32 %v1018_v36, %v970_v30  ;;  %v971_v54 = vpop.f32.mrf.mxu1  ;;  %v923_v55 = vadd.f32 %v922_v48, %v2823_v63  ;;  %v1720_v36 = vld [vmem:[%s3282_s1 + $0x58] sm:$0xf0]  ;;  %v2138_v48 = vld [vmem:[%s3282_s1 + $0x254] sm:$0xf0] }
  0xd5   : > { %v1723_v44 = vor.u32 %v2072_v35, %v1720_v36 }
  0xd6   : > { %1505 = vst [vmem:[%s2846_s26 + $0x80] sm:$0xff] %v1019_v45  ;;  %v972_v4 = vadd.f32 %v971_v54, %v923_v55  ;;  %v1974_v45 = vld [vmem:[%s3282_s1 + $0x248] sm:$0xf] }
  0xd7   : > { %v1975_v54 = vor.u32 %v2138_v48, %v1974_v45  ;;  %1347 = vmatpush.bf16.msra.mxu1 %v1723_v44 }
  0xd9   : > { %1298 = vmatpush.bf16.msra.mxu0 %v1975_v54 }
  0xda   : > { %v2936_v7 = vpop.f32.mrf.mxu3 }
  0xdb   : > { %v1020_v5 = vpop.f32.mrf.mxu2  ;;  %v925_v8 = vpop.f32.mrf.mxu0 }
  0xdc   : > { %v1021_v6 = vadd.f32 %v1020_v5, %v972_v4  ;;  %v926_v9 = vadd.f32 %v925_v8, %v2823_v63  ;;  %v974_v10 = vpop.f32.mrf.mxu1  ;;  %v2100_v5 = vld [vmem:[%s3282_s1 + $0x12c] sm:$0xf] }
  0xdd   : > { %v2132_v8 = vld [vmem:[%s3282_s1 + $0x22c] sm:$0xf] }
  0xde   : > { %1509 = vst [vmem:[%s2846_s26 + $0xa0] sm:$0xff] %v1021_v6  ;;  %1120 = vmatmul.bf16.gmra.mxu0 %v2625_v1  ;;  %v975_v14 = vadd.f32 %v974_v10, %v926_v9  ;;  %v1832_v6 = vld [vmem:[%s3282_s1 + $0x138] sm:$0xf0] }
  0xdf   : > { %1169 = vmatmul.bf16.gmra.mxu1 %v2627_v2  ;;  %1267 = vmatmul.bf16.gmra.mxu3 %v2625_v1  ;;  %v1835_v9 = vor.u32 %v2100_v5, %v1832_v6  ;;  %v1960_v10 = vld [vmem:[%s3282_s1 + $0x238] sm:$0xf0] }
  0xe0   : > { %1218 = vmatmul.bf16.gmra.mxu2 %v2623_v0  ;;  %v1963_v15 = vor.u32 %v2132_v8, %v1960_v10  ;;  %v1944_v5 = vld [vmem:[%s3282_s1 + $0x218] sm:$0xf0] }
  0xe1   : > { %1397 = vmatpush.bf16.msra.mxu2 %v1835_v9 }
  0xe2   : > { %v2956_v31 = vpop.f32.mrf.mxu3  ;;  %1446 = vmatpush.bf16.msra.mxu3 %v1963_v15 }
  0xe3   : > { %v1023_v28 = vpop.f32.mrf.mxu2  ;;  %v927_v32 = vpop.f32.mrf.mxu0 }
  0xe4   : > { %v1024_v30 = vadd.f32 %v1023_v28, %v975_v14  ;;  %v976_v33 = vpop.f32.mrf.mxu1  ;;  %v928_v34 = vadd.f32 %v927_v32, %v2823_v63 }
  0xe6   : > { %1513 = vst [vmem:[%s2846_s26 + $0xc0] sm:$0xff] %v1024_v30  ;;  %v977_v55 = vadd.f32 %v976_v33, %v928_v34  ;;  %v1704_v30 = vld [vmem:[%s3282_s1 + $0x38] sm:$0xf0]  ;;  %v1958_v33 = vld [vmem:[%s3282_s1 + $0x228] sm:$0xf] }
  0xe7   : > { %v1707_v32 = vor.u32 %v2068_v29, %v1704_v30  ;;  %v2134_v34 = vld [vmem:[%s3282_s1 + $0x234] sm:$0xf0]  ;;  %v1942_v29 = vld [vmem:[%s3282_s1 + $0x208] sm:$0xf] }
  0xe8   : > { %v1959_v35 = vor.u32 %v2134_v34, %v1958_v33  ;;  %v2130_v30 = vld [vmem:[%s3282_s1 + $0x214] sm:$0xf0] }
  0xe9   : > { %1348 = vmatpush.bf16.msra.mxu1 %v1707_v32  ;;  %v1943_v32 = vor.u32 %v2130_v30, %v1942_v29 }
  0xea   : > { %v2972_v59 = vpop.f32.mrf.mxu3  ;;  %1299 = vmatpush.bf16.msra.mxu0 %v1959_v35 }
  0xeb   : > { %v1025_v57 = vpop.f32.mrf.mxu2  ;;  %v930_v60 = vpop.f32.mrf.mxu0 }
  0xec   : > { %v1026_v58 = vadd.f32 %v1025_v57, %v977_v55  ;;  %v931_v61 = vadd.f32 %v930_v60, %v2823_v63  ;;  %v979_v62 = vpop.f32.mrf.mxu1  ;;  %v2096_v60 = vld [vmem:[%s3282_s1 + $0x10c] sm:$0xf] }
  0xee   : > { %1517 = vst [vmem:[%s2846_s26 + $0xe0] sm:$0xff] %v1026_v58  ;;  %1125 = vmatmul.bf16.gmra.mxu0 %v2665_v25  ;;  %v980_v4 = vadd.f32 %v979_v62, %v931_v61  ;;  %v1816_v61 = vld [vmem:[%s3282_s1 + $0x118] sm:$0xf0]  ;;  %v2128_v62 = vld [vmem:[%s3282_s1 + $0x20c] sm:$0xf] }
  0xef   : > { %1174 = vmatmul.bf16.gmra.mxu1 %v2667_v26  ;;  %1272 = vmatmul.bf16.gmra.mxu3 %v2665_v25  ;;  %v1947_v8 = vor.u32 %v2128_v62, %v1944_v5 }
  0xf0   : > { %1223 = vmatmul.bf16.gmra.mxu2 %v2663_v24  ;;  %1300 = vmatpush.bf16.msra.mxu0 %v1943_v32 }
  0xf1   : > { %1447 = vmatpush.bf16.msra.mxu3 %v1947_v8 }
  0xf2   : > { %v2992_v17 = vpop.f32.mrf.mxu3 }
  0xf3   : > { %v1028_v14 = vpop.f32.mrf.mxu2  ;;  %v932_v22 = vpop.f32.mrf.mxu0 }
  0xf4   : > { %v1029_v16 = vadd.f32 %v1028_v14, %v980_v4  ;;  %v981_v27 = vpop.f32.mrf.mxu1  ;;  %v933_v28 = vadd.f32 %v932_v22, %v2823_v63  ;;  %v1819_v4 = vor.u32 %v2096_v60, %v1816_v61  ;;  %v2064_v22 = vld [vmem:[%s3282_s1 + $0xc] sm:$0xf] }
  0xf6   : > { %1521 = vst [vmem:[%s2846_s26 + $0x100] sm:$0xff] %v1029_v16  ;;  %v982_v36 = vadd.f32 %v981_v27, %v933_v28  ;;  %1398 = vmatpush.bf16.msra.mxu2 %v1819_v4  ;;  %v1688_v27 = vld [vmem:[%s3282_s1 + $0x18] sm:$0xf0] }
  0xf7   : > { %v1691_v28 = vor.u32 %v2064_v22, %v1688_v27 }
  0xf9   : > { %1349 = vmatpush.bf16.msra.mxu1 %v1691_v28 }
  0xfa   : > { %v3008_v48 = vpop.f32.mrf.mxu3 }
  0xfb   : > { %v1030_v44 = vpop.f32.mrf.mxu2  ;;  %v935_v54 = vpop.f32.mrf.mxu0 }
  0xfc   : > { %v1031_v45 = vadd.f32 %v1030_v44, %v982_v36  ;;  %v936_v55 = vadd.f32 %v935_v54, %v2823_v63  ;;  %v984_v57 = vpop.f32.mrf.mxu1 }
  0xfe   : > { %1525 = vst [vmem:[%s2846_s26 + $0x120] sm:$0xff] %v1031_v45  ;;  %1130 = vmatmul.bf16.gmra.mxu0 %v2705_v50  ;;  %v985_v58 = vadd.f32 %v984_v57, %v936_v55 }
  0xff   : > { %1179 = vmatmul.bf16.gmra.mxu1 %v2707_v53  ;;  %1277 = vmatmul.bf16.gmra.mxu3 %v2705_v50 }
 0x100   : > { %1228 = vmatmul.bf16.gmra.mxu2 %v2703_v49 }
 0x102   : > { %v3028_v10 = vpop.f32.mrf.mxu3 }
 0x103   : > { %v1033_v6 = vpop.f32.mrf.mxu2  ;;  %v937_v14 = vpop.f32.mrf.mxu0 }
 0x104   : > { %v1034_v9 = vadd.f32 %v1033_v6, %v985_v58  ;;  %v986_v15 = vpop.f32.mrf.mxu1  ;;  %v938_v16 = vadd.f32 %v937_v14, %v2823_v63 }
 0x106   : > { %1529 = vst [vmem:[%s2846_s26 + $0x140] sm:$0xff] %v1034_v9  ;;  %v987_v33 = vadd.f32 %v986_v15, %v938_v16 }
 0x10a   : > { %v3044_v36 = vpop.f32.mrf.mxu3 }
 0x10b   : > { %v1035_v34 = vpop.f32.mrf.mxu2  ;;  %v940_v44 = vpop.f32.mrf.mxu0 }
 0x10c   : > { %v1036_v35 = vadd.f32 %v1035_v34, %v987_v33  ;;  %v941_v45 = vadd.f32 %v940_v44, %v2823_v63  ;;  %v989_v54 = vpop.f32.mrf.mxu1  ;;  %v3069_v34 = vperm.slane %v2808_v56, 1 }
 0x10e   : > { %1533 = vst [vmem:[%s2846_s26 + $0x160] sm:$0xff] %v1036_v35  ;;  %1135 = vmatmul.bf16.gmra.mxu0 %v2745_v12  ;;  %v990_v55 = vadd.f32 %v989_v54, %v941_v45  ;;  %v1058_v44 = vadd.f32 %v2848_v18, %v3069_v34  ;;  %v1060_v18 = vadd.f32 %v2864_v37, %v3069_v34 }
 0x10f   : > { %1184 = vmatmul.bf16.gmra.mxu1 %v2747_v13  ;;  %1282 = vmatmul.bf16.gmra.mxu3 %v2745_v12 }
 0x110   : > { %1233 = vmatmul.bf16.gmra.mxu2 %v2743_v11 }
 0x112   : > { %v3052_v60 = vpop.f32.mrf.mxu3 }
 0x113   : > { %v1038_v57 = vpop.f32.mrf.mxu2  ;;  %v942_v61 = vpop.f32.mrf.mxu0 }
 0x114   : > { %v1039_v58 = vadd.f32 %v1038_v57, %v990_v55  ;;  %v991_v62 = vpop.f32.mrf.mxu1  ;;  %v943_v4 = vadd.f32 %v942_v61, %v2823_v63 }
 0x116   : > { %1537 = vst [vmem:[%s2846_s26 + $0x180] sm:$0xff] %v1039_v58  ;;  %v992_v5 = vadd.f32 %v991_v62, %v943_v4 }
 0x11a   : > { %v3056_v9 = vpop.f32.mrf.mxu3 }
 0x11b   : > { %v1040_v6 = vpop.f32.mrf.mxu2  ;;  %v945_v14 = vpop.f32.mrf.mxu0 }
 0x11c   : > { %v1041_v8 = vadd.f32 %v1040_v6, %v992_v5  ;;  %v946_v15 = vadd.f32 %v945_v14, %v2823_v63  ;;  %v994_v16 = vpop.f32.mrf.mxu1 }
 0x11e   : > { %1541 = vst [vmem:[%s2846_s26 + $0x1a0] sm:$0xff] %v1041_v8  ;;  %1140 = vmatmul.bf16.gmra.mxu0 %v2785_v39  ;;  %v995_v22 = vadd.f32 %v994_v16, %v946_v15  ;;  %v1063_v16 = vadd.f32 %v2884_v3, %v3069_v34  ;;  %v1065_v3 = vadd.f32 %v2900_v23, %v3069_v34 }
 0x11f   : > { %1189 = vmatmul.bf16.gmra.mxu1 %v2787_v43  ;;  %1287 = vmatmul.bf16.gmra.mxu3 %v2785_v39 }
 0x120   : > { %1238 = vmatmul.bf16.gmra.mxu2 %v2783_v38 }
 0x122   : > { %v3064_v29 = vpop.f32.mrf.mxu3 }
 0x123   : > { %v1043_v27 = vpop.f32.mrf.mxu2  ;;  %v947_v30 = vpop.f32.mrf.mxu0 }
 0x124   : > { %v1044_v28 = vadd.f32 %v1043_v27, %v995_v22  ;;  %v996_v32 = vpop.f32.mrf.mxu1  ;;  %v948_v33 = vadd.f32 %v947_v30, %v2823_v63  ;;  %v3080_v63 = vperm.slane %v2808_v56, 2 }
 0x126   : > { %1545 = vst [vmem:[%s2846_s26 + $0x1c0] sm:$0xff] %v1044_v28  ;;  %v997_v35 = vadd.f32 %v996_v32, %v948_v33 }
 0x12a   : > { %v3073_v55 = vpop.f32.mrf.mxu3 }
 0x12b   : > { %v1045_v45 = vpop.f32.mrf.mxu2  ;;  %v1106_v57 = vpop.f32.mrf.mxu0 }
 0x12c   : > { %v1046_v54 = vadd.f32 %v1045_v45, %v997_v35  ;;  %v1107_v58 = vadd.f32 %v1106_v57, %v1058_v44  ;;  %v1155_v61 = vpop.f32.mrf.mxu1 }
 0x12e   : > { %1549 = vst [vmem:[%s2846_s26 + $0x1e0] sm:$0xff] %v1046_v54  ;;  %v1156_v62 = vadd.f32 %v1155_v61, %v1107_v58  ;;  %1301 = vmatmul.bf16.vlgmr.msra.gmra.mxu0 %v2489_v52 }
 0x12f   : > { %1350 = vmatmul.bf16.vlgmr.msra.gmra.mxu1 %v2482_v46  ;;  %1448 = vmatmul.bf16.vlgmr.msra.gmra.mxu3 %v2489_v52 }
 0x130   : > { %1399 = vmatmul.bf16.vlgmr.msra.gmra.mxu2 %v2487_v51  ;;  %1490 = vst [vmem:[%s2846_s26 + $0x8] sm:$0xff] %v1156_v62 }
 0x132   : > { %v1253_v6 = vpop.f32.mrf.mxu3 }
 0x133   : > { %v1204_v4 = vpop.f32.mrf.mxu2  ;;  %v1108_v8 = vpop.f32.mrf.mxu0 }
 0x134   : > { %v1205_v5 = vadd.f32 %v1204_v4, %v3080_v63  ;;  %v1109_v14 = vadd.f32 %v1108_v8, %v1060_v18  ;;  %v1157_v15 = vpop.f32.mrf.mxu1 }
 0x136   : > { %v3087_v46 = vadd.f32 %v1253_v6, %v1205_v5  ;;  %v1158_v51 = vadd.f32 %v1157_v15, %v1109_v14 }
 0x138   : > { %1494 = vst [vmem:[%s2846_s26 + $0x28] sm:$0xff] %v1158_v51 }
 0x13a   : > { %v1255_v27 = vpop.f32.mrf.mxu3 }
 0x13b   : > { %v1206_v22 = vpop.f32.mrf.mxu2  ;;  %v1111_v37 = vpop.f32.mrf.mxu0 }
 0x13c   : > { %v1207_v52 = vadd.f32 %v1206_v22, %v3080_v63  ;;  %v1112_v28 = vadd.f32 %v1111_v37, %v1063_v16  ;;  %v1160_v30 = vpop.f32.mrf.mxu1 }
 0x13e   : > { %v3093_v32 = vadd.f32 %v1255_v27, %v1207_v52  ;;  %v1161_v33 = vadd.f32 %v1160_v30, %v1112_v28  ;;  %1306 = vmatmul.bf16.gmra.mxu0 %v2547_v21 }
 0x13f   : > { %1355 = vmatmul.bf16.gmra.mxu1 %v2543_v19  ;;  %1453 = vmatmul.bf16.gmra.mxu3 %v2547_v21  ;;  %v1068_v19 = vadd.f32 %v2920_v47, %v3069_v34  ;;  %v1070_v47 = vadd.f32 %v2936_v7, %v3069_v34 }
 0x140   : > { %1404 = vmatmul.bf16.gmra.mxu2 %v2545_v20  ;;  %1498 = vst [vmem:[%s2846_s26 + $0x48] sm:$0xff] %v1161_v33 }
 0x142   : > { %v1258_v45 = vpop.f32.mrf.mxu3 }
 0x143   : > { %v1209_v35 = vpop.f32.mrf.mxu2  ;;  %v1113_v54 = vpop.f32.mrf.mxu0 }
 0x144   : > { %v1210_v44 = vadd.f32 %v1209_v35, %v3080_v63  ;;  %v1114_v57 = vadd.f32 %v1113_v54, %v1065_v3  ;;  %v1162_v58 = vpop.f32.mrf.mxu1 }
 0x146   : > { %v3103_v61 = vadd.f32 %v1258_v45, %v1210_v44  ;;  %v1163_v62 = vadd.f32 %v1162_v58, %v1114_v57 }
 0x148   : > { %1502 = vst [vmem:[%s2846_s26 + $0x68] sm:$0xff] %v1163_v62 }
 0x14a   : > { %v1260_v18 = vpop.f32.mrf.mxu3 }
 0x14b   : > { %v1211_v20 = vpop.f32.mrf.mxu2  ;;  %v1116_v23 = vpop.f32.mrf.mxu0 }
 0x14c   : > { %v1212_v21 = vadd.f32 %v1211_v20, %v3080_v63  ;;  %v1117_v4 = vadd.f32 %v1116_v23, %v1068_v19  ;;  %v1165_v5 = vpop.f32.mrf.mxu1 }
 0x14e   : > { %v3109_v6 = vadd.f32 %v1260_v18, %v1212_v21  ;;  %v1166_v8 = vadd.f32 %v1165_v5, %v1117_v4  ;;  %1311 = vmatmul.bf16.gmra.mxu0 %v2587_v42 }
 0x14f   : > { %1360 = vmatmul.bf16.gmra.mxu1 %v2583_v40  ;;  %1458 = vmatmul.bf16.gmra.mxu3 %v2587_v42  ;;  %v1073_v40 = vadd.f32 %v2956_v31, %v3069_v34  ;;  %v1075_v31 = vadd.f32 %v2972_v59, %v3069_v34 }
 0x150   : > { %1409 = vmatmul.bf16.gmra.mxu2 %v2585_v41  ;;  %1506 = vst [vmem:[%s2846_s26 + $0x88] sm:$0xff] %v1166_v8 }
 0x152   : > { %v1263_v51 = vpop.f32.mrf.mxu3 }
 0x153   : > { %v1214_v14 = vpop.f32.mrf.mxu2  ;;  %v1118_v16 = vpop.f32.mrf.mxu0 }
 0x154   : > { %v1215_v15 = vadd.f32 %v1214_v14, %v3080_v63  ;;  %v1119_v22 = vadd.f32 %v1118_v16, %v1070_v47  ;;  %v1167_v52 = vpop.f32.mrf.mxu1 }
 0x156   : > { %v3119_v27 = vadd.f32 %v1263_v51, %v1215_v15  ;;  %v1168_v37 = vadd.f32 %v1167_v52, %v1119_v22 }
 0x158   : > { %1510 = vst [vmem:[%s2846_s26 + $0xa8] sm:$0xff] %v1168_v37 }
 0x15a   : > { %v1265_v28 = vpop.f32.mrf.mxu3 }
 0x15b   : > { %v1216_v41 = vpop.f32.mrf.mxu2  ;;  %v1121_v7 = vpop.f32.mrf.mxu0 }
 0x15c   : > { %v1217_v42 = vadd.f32 %v1216_v41, %v3080_v63  ;;  %v1122_v30 = vadd.f32 %v1121_v7, %v1073_v40  ;;  %v1170_v33 = vpop.f32.mrf.mxu1 }
 0x15e   : > { %v3125_v3 = vadd.f32 %v1265_v28, %v1217_v42  ;;  %v1171_v35 = vadd.f32 %v1170_v33, %v1122_v30  ;;  %1316 = vmatmul.bf16.gmra.mxu0 %v2627_v2 }
 0x15f   : > { %1365 = vmatmul.bf16.gmra.mxu1 %v2623_v0  ;;  %1463 = vmatmul.bf16.gmra.mxu3 %v2627_v2  ;;  %v1078_v0 = vadd.f32 %v2992_v17, %v3069_v34  ;;  %v1080_v17 = vadd.f32 %v3008_v48, %v3069_v34 }
 0x160   : > { %1414 = vmatmul.bf16.gmra.mxu2 %v2625_v1  ;;  %1514 = vst [vmem:[%s2846_s26 + $0xc8] sm:$0xff] %v1171_v35 }
 0x162   : > { %v1268_v54 = vpop.f32.mrf.mxu3 }
 0x163   : > { %v1219_v44 = vpop.f32.mrf.mxu2  ;;  %v1123_v57 = vpop.f32.mrf.mxu0 }
 0x164   : > { %v1220_v45 = vadd.f32 %v1219_v44, %v3080_v63  ;;  %v1124_v58 = vadd.f32 %v1123_v57, %v1075_v31  ;;  %v1172_v62 = vpop.f32.mrf.mxu1 }
 0x166   : > { %v3135_v19 = vadd.f32 %v1268_v54, %v1220_v45  ;;  %v1173_v20 = vadd.f32 %v1172_v62, %v1124_v58 }
 0x168   : > { %1518 = vst [vmem:[%s2846_s26 + $0xe8] sm:$0xff] %v1173_v20 }
 0x16a   : > { %v1270_v21 = vpop.f32.mrf.mxu3 }
 0x16b   : > { %v1221_v1 = vpop.f32.mrf.mxu2  ;;  %v1126_v59 = vpop.f32.mrf.mxu0 }
 0x16c   : > { %v1222_v2 = vadd.f32 %v1221_v1, %v3080_v63  ;;  %v1127_v18 = vadd.f32 %v1126_v59, %v1078_v0  ;;  %v1175_v23 = vpop.f32.mrf.mxu1 }
 0x16e   : > { %v3141_v4 = vadd.f32 %v1270_v21, %v1222_v2  ;;  %v1176_v5 = vadd.f32 %v1175_v23, %v1127_v18  ;;  %1321 = vmatmul.bf16.gmra.mxu0 %v2667_v26 }
 0x16f   : > { %1370 = vmatmul.bf16.gmra.mxu1 %v2663_v24  ;;  %1468 = vmatmul.bf16.gmra.mxu3 %v2667_v26  ;;  %v1083_v24 = vadd.f32 %v3028_v10, %v3069_v34  ;;  %v1085_v10 = vadd.f32 %v3044_v36, %v3069_v34 }
 0x170   : > { %1419 = vmatmul.bf16.gmra.mxu2 %v2665_v25  ;;  %1522 = vst [vmem:[%s2846_s26 + $0x108] sm:$0xff] %v1176_v5 }
 0x172   : > { %v1273_v14 = vpop.f32.mrf.mxu3 }
 0x173   : > { %v1224_v8 = vpop.f32.mrf.mxu2  ;;  %v1128_v15 = vpop.f32.mrf.mxu0 }
 0x174   : > { %v1225_v47 = vadd.f32 %v1224_v8, %v3080_v63  ;;  %v1129_v51 = vadd.f32 %v1128_v15, %v1080_v17  ;;  %v1177_v16 = vpop.f32.mrf.mxu1 }
 0x176   : > { %v3151_v22 = vadd.f32 %v1273_v14, %v1225_v47  ;;  %v1178_v52 = vadd.f32 %v1177_v16, %v1129_v51 }
 0x178   : > { %1526 = vst [vmem:[%s2846_s26 + $0x128] sm:$0xff] %v1178_v52 }
 0x17a   : > { %v1275_v37 = vpop.f32.mrf.mxu3 }
 0x17b   : > { %v1226_v25 = vpop.f32.mrf.mxu2  ;;  %v1131_v48 = vpop.f32.mrf.mxu0 }
 0x17c   : > { %v1227_v26 = vadd.f32 %v1226_v25, %v3080_v63  ;;  %v1132_v40 = vadd.f32 %v1131_v48, %v1083_v24  ;;  %v1180_v41 = vpop.f32.mrf.mxu1 }
 0x17e   : > { %v3157_v42 = vadd.f32 %v1275_v37, %v1227_v26  ;;  %v1181_v28 = vadd.f32 %v1180_v41, %v1132_v40  ;;  %1326 = vmatmul.bf16.gmra.mxu0 %v2707_v53 }
 0x17f   : > { %1375 = vmatmul.bf16.gmra.mxu1 %v2703_v49  ;;  %1473 = vmatmul.bf16.gmra.mxu3 %v2707_v53  ;;  %v1088_v49 = vadd.f32 %v3052_v60, %v3069_v34  ;;  %v1090_v60 = vadd.f32 %v3056_v9, %v3069_v34 }
 0x180   : > { %1424 = vmatmul.bf16.gmra.mxu2 %v2705_v50  ;;  %1530 = vst [vmem:[%s2846_s26 + $0x148] sm:$0xff] %v1181_v28 }
 0x182   : > { %v1278_v33 = vpop.f32.mrf.mxu3 }
 0x183   : > { %v1229_v7 = vpop.f32.mrf.mxu2  ;;  %v1133_v35 = vpop.f32.mrf.mxu0 }
 0x184   : > { %v1230_v30 = vadd.f32 %v1229_v7, %v3080_v63  ;;  %v1134_v31 = vadd.f32 %v1133_v35, %v1085_v10  ;;  %v1182_v44 = vpop.f32.mrf.mxu1 }
 0x186   : > { %v3167_v45 = vadd.f32 %v1278_v33, %v1230_v30  ;;  %v1183_v54 = vadd.f32 %v1182_v44, %v1134_v31 }
 0x188   : > { %1534 = vst [vmem:[%s2846_s26 + $0x168] sm:$0xff] %v1183_v54 }
 0x18a   : > { %v1280_v57 = vpop.f32.mrf.mxu3 }
 0x18b   : > { %v1231_v50 = vpop.f32.mrf.mxu2  ;;  %v1136_v36 = vpop.f32.mrf.mxu0 }
 0x18c   : > { %v1232_v53 = vadd.f32 %v1231_v50, %v3080_v63  ;;  %v1137_v58 = vadd.f32 %v1136_v36, %v1088_v49  ;;  %v1185_v62 = vpop.f32.mrf.mxu1 }
 0x18e   : > { %v3173_v20 = vadd.f32 %v1280_v57, %v1232_v53  ;;  %v1186_v0 = vadd.f32 %v1185_v62, %v1137_v58  ;;  %1331 = vmatmul.bf16.gmra.mxu0 %v2747_v13 }
 0x18f   : > { %1380 = vmatmul.bf16.gmra.mxu1 %v2743_v11  ;;  %1478 = vmatmul.bf16.gmra.mxu3 %v2747_v13  ;;  %v1093_v11 = vadd.f32 %v3064_v29, %v3069_v34  ;;  %v1095_v29 = vadd.f32 %v3073_v55, %v3069_v34  ;;  %v3204_v34 = vperm.slane %v2808_v56, 3 }
 0x190   : > { %1429 = vmatmul.bf16.gmra.mxu2 %v2745_v12  ;;  %1538 = vst [vmem:[%s2846_s26 + $0x188] sm:$0xff] %v1186_v0 }
 0x192   : > { %v1283_v21 = vpop.f32.mrf.mxu3 }
 0x193   : > { %v1234_v1 = vpop.f32.mrf.mxu2  ;;  %v1138_v59 = vpop.f32.mrf.mxu0 }
 0x194   : > { %v1235_v2 = vadd.f32 %v1234_v1, %v3080_v63  ;;  %v1139_v18 = vadd.f32 %v1138_v59, %v1090_v60  ;;  %v1187_v23 = vpop.f32.mrf.mxu1 }
 0x196   : > { %v3183_v5 = vadd.f32 %v1283_v21, %v1235_v2  ;;  %v1188_v17 = vadd.f32 %v1187_v23, %v1139_v18 }
 0x198   : > { %1542 = vst [vmem:[%s2846_s26 + $0x1a8] sm:$0xff] %v1188_v17 }
 0x19a   : > { %v1285_v8 = vpop.f32.mrf.mxu3 }
 0x19b   : > { %v1236_v12 = vpop.f32.mrf.mxu2  ;;  %v1141_v9 = vpop.f32.mrf.mxu0 }
 0x19c   : > { %v1237_v13 = vadd.f32 %v1236_v12, %v3080_v63  ;;  %v1142_v47 = vadd.f32 %v1141_v9, %v1093_v11  ;;  %v1190_v14 = vpop.f32.mrf.mxu1 }
 0x19e   : > { %v3189_v15 = vadd.f32 %v1285_v8, %v1237_v13  ;;  %v1191_v51 = vadd.f32 %v1190_v14, %v1142_v47  ;;  %1336 = vmatmul.bf16.gmra.mxu0 %v2787_v43 }
 0x19f   : > { %1385 = vmatmul.bf16.gmra.mxu1 %v2783_v38  ;;  %1483 = vmatmul.bf16.gmra.mxu3 %v2787_v43 }
 0x1a0   : > { %1434 = vmatmul.bf16.gmra.mxu2 %v2785_v39  ;;  %1546 = vst [vmem:[%s2846_s26 + $0x1c8] sm:$0xff] %v1191_v51 }
 0x1a2   : > { %v1288_v24 = vpop.f32.mrf.mxu3 }
 0x1a3   : > { %v1239_v16 = vpop.f32.mrf.mxu2  ;;  %v1143_v25 = vpop.f32.mrf.mxu0 }
 0x1a4   : > { %v1240_v52 = vadd.f32 %v1239_v16, %v3080_v63  ;;  %v1144_v26 = vadd.f32 %v1143_v25, %v1095_v29  ;;  %v1192_v37 = vpop.f32.mrf.mxu1 }
 0x1a6   : > { %v3199_v48 = vadd.f32 %v1288_v24, %v1240_v52  ;;  %v1193_v40 = vadd.f32 %v1192_v37, %v1144_v26 }
 0x1a8   : > { %1550 = vst [vmem:[%s2846_s26 + $0x1e8] sm:$0xff] %v1193_v40 }
 0x1aa   : > { %v1290_v43 = vpop.f32.mrf.mxu3 }
 0x1ab   : > { %v1241_v38 = vpop.f32.mrf.mxu2  ;;  %v1302_v41 = vpop.f32.mrf.mxu0 }
 0x1ac   : > { %v1242_v39 = vadd.f32 %v1241_v38, %v3080_v63  ;;  %v1303_v55 = vadd.f32 %v1302_v41, %v3087_v46  ;;  %v1351_v28 = vpop.f32.mrf.mxu1 }
 0x1ad   : > { %v1352_v7 = vadd.f32 %v1351_v28, %v3204_v34 }
 0x1ae   : > { %v3207_v10 = vadd.f32 %v1290_v43, %v1242_v39  ;;  %1491 = vst [vmem:[%s2846_s26 + $0x10] sm:$0xff] %v1303_v55 }
 0x1b2   : > { %v1449_v35 = vpop.f32.mrf.mxu3 }
 0x1b3   : > { %v1400_v30 = vpop.f32.mrf.mxu2  ;;  %v1304_v63 = vpop.f32.mrf.mxu0 }
 0x1b4   : > { %v1401_v33 = vadd.f32 %v1400_v30, %v1352_v7  ;;  %v1305_v31 = vadd.f32 %v1304_v63, %v3093_v32  ;;  %v1353_v44 = vpop.f32.mrf.mxu1 }
 0x1b5   : > { %v1354_v56 = vadd.f32 %v1353_v44, %v3204_v34 }
 0x1b6   : > { %v1450_v54 = vadd.f32 %v1449_v35, %v1401_v33  ;;  %1495 = vst [vmem:[%s2846_s26 + $0x30] sm:$0xff] %v1305_v31 }
 0x1b8   : > { %1492 = vst [vmem:[%s2846_s26 + $0x18] sm:$0xff] %v1450_v54 }
 0x1ba   : > { %v1451_v50 = vpop.f32.mrf.mxu3 }
 0x1bb   : > { %v1402_v46 = vpop.f32.mrf.mxu2  ;;  %v1307_v53 = vpop.f32.mrf.mxu0 }
 0x1bc   : > { %v1403_v49 = vadd.f32 %v1402_v46, %v1354_v56  ;;  %v1308_v57 = vadd.f32 %v1307_v53, %v3103_v61  ;;  %v1356_v36 = vpop.f32.mrf.mxu1 }
 0x1bd   : > { %v1357_v32 = vadd.f32 %v1356_v36, %v3204_v34 }
 0x1be   : > { %v1452_v58 = vadd.f32 %v1451_v50, %v1403_v49  ;;  %1499 = vst [vmem:[%s2846_s26 + $0x50] sm:$0xff] %v1308_v57 }
 0x1c0   : > { %1496 = vst [vmem:[%s2846_s26 + $0x38] sm:$0xff] %v1452_v58 }
 0x1c2   : > { %v1454_v60 = vpop.f32.mrf.mxu3 }
 0x1c3   : > { %v1405_v62 = vpop.f32.mrf.mxu2  ;;  %v1309_v1 = vpop.f32.mrf.mxu0 }
 0x1c4   : > { %v1406_v0 = vadd.f32 %v1405_v62, %v1357_v32  ;;  %v1310_v2 = vadd.f32 %v1309_v1, %v3109_v6  ;;  %v1358_v21 = vpop.f32.mrf.mxu1 }
 0x1c5   : > { %v1359_v61 = vadd.f32 %v1358_v21, %v3204_v34 }
 0x1c6   : > { %v1455_v59 = vadd.f32 %v1454_v60, %v1406_v0  ;;  %1503 = vst [vmem:[%s2846_s26 + $0x70] sm:$0xff] %v1310_v2 }
 0x1c8   : > { %1500 = vst [vmem:[%s2846_s26 + $0x58] sm:$0xff] %v1455_v59 }
 0x1ca   : > { %v1456_v17 = vpop.f32.mrf.mxu3 }
 0x1cb   : > { %v1407_v18 = vpop.f32.mrf.mxu2  ;;  %v1312_v11 = vpop.f32.mrf.mxu0 }
 0x1cc   : > { %v1408_v23 = vadd.f32 %v1407_v18, %v1359_v61  ;;  %v1313_v12 = vadd.f32 %v1312_v11, %v3119_v27  ;;  %v1361_v13 = vpop.f32.mrf.mxu1 }
 0x1cd   : > { %v1362_v6 = vadd.f32 %v1361_v13, %v3204_v34 }
 0x1ce   : > { %v1457_v8 = vadd.f32 %v1456_v17, %v1408_v23  ;;  %1507 = vst [vmem:[%s2846_s26 + $0x90] sm:$0xff] %v1313_v12 }
 0x1d0   : > { %1504 = vst [vmem:[%s2846_s26 + $0x78] sm:$0xff] %v1457_v8 }
 0x1d2   : > { %v1459_v14 = vpop.f32.mrf.mxu3 }
 0x1d3   : > { %v1410_v9 = vpop.f32.mrf.mxu2  ;;  %v1314_v51 = vpop.f32.mrf.mxu0 }
 0x1d4   : > { %v1411_v47 = vadd.f32 %v1410_v9, %v1362_v6  ;;  %v1315_v29 = vadd.f32 %v1314_v51, %v3125_v3  ;;  %v1363_v16 = vpop.f32.mrf.mxu1 }
 0x1d5   : > { %v1364_v27 = vadd.f32 %v1363_v16, %v3204_v34 }
 0x1d6   : > { %v1460_v52 = vadd.f32 %v1459_v14, %v1411_v47  ;;  %1511 = vst [vmem:[%s2846_s26 + $0xb0] sm:$0xff] %v1315_v29 }
 0x1d8   : > { %1508 = vst [vmem:[%s2846_s26 + $0x98] sm:$0xff] %v1460_v52 }
 0x1da   : > { %v1461_v26 = vpop.f32.mrf.mxu3 }
 0x1db   : > { %v1412_v24 = vpop.f32.mrf.mxu2  ;;  %v1317_v37 = vpop.f32.mrf.mxu0 }
 0x1dc   : > { %v1413_v25 = vadd.f32 %v1412_v24, %v1364_v27  ;;  %v1318_v40 = vadd.f32 %v1317_v37, %v3135_v19  ;;  %v1366_v38 = vpop.f32.mrf.mxu1 }
 0x1dd   : > { %v1367_v3 = vadd.f32 %v1366_v38, %v3204_v34 }
 0x1de   : > { %v1462_v39 = vadd.f32 %v1461_v26, %v1413_v25  ;;  %1515 = vst [vmem:[%s2846_s26 + $0xd0] sm:$0xff] %v1318_v40 }
 0x1e0   : > { %1512 = vst [vmem:[%s2846_s26 + $0xb8] sm:$0xff] %v1462_v39 }
 0x1e2   : > { %v1464_v55 = vpop.f32.mrf.mxu3 }
 0x1e3   : > { %v1415_v43 = vpop.f32.mrf.mxu2  ;;  %v1319_v28 = vpop.f32.mrf.mxu0 }
 0x1e4   : > { %v1416_v41 = vadd.f32 %v1415_v43, %v1367_v3  ;;  %v1320_v7 = vadd.f32 %v1319_v28, %v3141_v4  ;;  %v1368_v30 = vpop.f32.mrf.mxu1 }
 0x1e5   : > { %v1369_v19 = vadd.f32 %v1368_v30, %v3204_v34 }
 0x1e6   : > { %v1465_v33 = vadd.f32 %v1464_v55, %v1416_v41  ;;  %1519 = vst [vmem:[%s2846_s26 + $0xf0] sm:$0xff] %v1320_v7 }
 0x1e8   : > { %1516 = vst [vmem:[%s2846_s26 + $0xd8] sm:$0xff] %v1465_v33 }
 0x1ea   : > { %v1466_v31 = vpop.f32.mrf.mxu3 }
 0x1eb   : > { %v1417_v35 = vpop.f32.mrf.mxu2  ;;  %v1322_v44 = vpop.f32.mrf.mxu0 }
 0x1ec   : > { %v1418_v63 = vadd.f32 %v1417_v35, %v1369_v19  ;;  %v1323_v54 = vadd.f32 %v1322_v44, %v3151_v22  ;;  %v1371_v56 = vpop.f32.mrf.mxu1 }
 0x1ed   : > { %v1372_v4 = vadd.f32 %v1371_v56, %v3204_v34 }
 0x1ee   : > { %v1467_v46 = vadd.f32 %v1466_v31, %v1418_v63  ;;  %1523 = vst [vmem:[%s2846_s26 + $0x110] sm:$0xff] %v1323_v54 }
 0x1f0   : > { %1520 = vst [vmem:[%s2846_s26 + $0xf8] sm:$0xff] %v1467_v46 }
 0x1f2   : > { %v1469_v53 = vpop.f32.mrf.mxu3 }
 0x1f3   : > { %v1420_v49 = vpop.f32.mrf.mxu2  ;;  %v1324_v57 = vpop.f32.mrf.mxu0 }
 0x1f4   : > { %v1421_v50 = vadd.f32 %v1420_v49, %v1372_v4  ;;  %v1325_v36 = vadd.f32 %v1324_v57, %v3157_v42  ;;  %v1373_v58 = vpop.f32.mrf.mxu1 }
 0x1f5   : > { %v1374_v22 = vadd.f32 %v1373_v58, %v3204_v34 }
 0x1f6   : > { %v1470_v32 = vadd.f32 %v1469_v53, %v1421_v50  ;;  %1527 = vst [vmem:[%s2846_s26 + $0x130] sm:$0xff] %v1325_v36 }
 0x1f8   : > { %1524 = vst [vmem:[%s2846_s26 + $0x118] sm:$0xff] %v1470_v32 }
 0x1fa   : > { %v1471_v60 = vpop.f32.mrf.mxu3 }
 0x1fb   : > { %v1422_v62 = vpop.f32.mrf.mxu2  ;;  %v1327_v1 = vpop.f32.mrf.mxu0 }
 0x1fc   : > { %v1423_v0 = vadd.f32 %v1422_v62, %v1374_v22  ;;  %v1328_v2 = vadd.f32 %v1327_v1, %v3167_v45  ;;  %v1376_v21 = vpop.f32.mrf.mxu1 }
 0x1fd   : > { %v1377_v42 = vadd.f32 %v1376_v21, %v3204_v34 }
 0x1fe   : > { %v1472_v59 = vadd.f32 %v1471_v60, %v1423_v0  ;;  %1531 = vst [vmem:[%s2846_s26 + $0x150] sm:$0xff] %v1328_v2 }
 0x200   : > { %1528 = vst [vmem:[%s2846_s26 + $0x138] sm:$0xff] %v1472_v59 }
 0x202   : > { %v1474_v23 = vpop.f32.mrf.mxu3 }
 0x203   : > { %v1425_v61 = vpop.f32.mrf.mxu2  ;;  %v1329_v17 = vpop.f32.mrf.mxu0 }
 0x204   : > { %v1426_v18 = vadd.f32 %v1425_v61, %v1377_v42  ;;  %v1330_v11 = vadd.f32 %v1329_v17, %v3173_v20  ;;  %v1378_v12 = vpop.f32.mrf.mxu1 }
 0x205   : > { %v1379_v45 = vadd.f32 %v1378_v12, %v3204_v34 }
 0x206   : > { %v1475_v13 = vadd.f32 %v1474_v23, %v1426_v18  ;;  %1535 = vst [vmem:[%s2846_s26 + $0x170] sm:$0xff] %v1330_v11 }
 0x208   : > { %1532 = vst [vmem:[%s2846_s26 + $0x158] sm:$0xff] %v1475_v13 }
 0x20a   : > { %v1476_v9 = vpop.f32.mrf.mxu3 }
 0x20b   : > { %v1427_v8 = vpop.f32.mrf.mxu2  ;;  %v1332_v47 = vpop.f32.mrf.mxu0 }
 0x20c   : > { %v1428_v6 = vadd.f32 %v1427_v8, %v1379_v45  ;;  %v1333_v14 = vadd.f32 %v1332_v47, %v3183_v5  ;;  %v1381_v51 = vpop.f32.mrf.mxu1 }
 0x20d   : > { %v1382_v20 = vadd.f32 %v1381_v51, %v3204_v34 }
 0x20e   : > { %v1477_v29 = vadd.f32 %v1476_v9, %v1428_v6  ;;  %1539 = vst [vmem:[%s2846_s26 + $0x190] sm:$0xff] %v1333_v14 }
 0x210   : > { %1536 = vst [vmem:[%s2846_s26 + $0x178] sm:$0xff] %v1477_v29 }
 0x212   : > { %v1479_v27 = vpop.f32.mrf.mxu3 }
 0x213   : > { %v1430_v16 = vpop.f32.mrf.mxu2  ;;  %v1334_v24 = vpop.f32.mrf.mxu0 }
 0x214   : > { %v1431_v52 = vadd.f32 %v1430_v16, %v1382_v20  ;;  %v1335_v25 = vadd.f32 %v1334_v24, %v3189_v15  ;;  %v1383_v26 = vpop.f32.mrf.mxu1 }
 0x215   : > { %v1384_v5 = vadd.f32 %v1383_v26, %v3204_v34 }
 0x216   : > { %v1480_v37 = vadd.f32 %v1479_v27, %v1431_v52  ;;  %1543 = vst [vmem:[%s2846_s26 + $0x1b0] sm:$0xff] %v1335_v25 }
 0x218   : > { %1540 = vst [vmem:[%s2846_s26 + $0x198] sm:$0xff] %v1480_v37 }
 0x21a   : > { %v1481_v39 = vpop.f32.mrf.mxu3 }
 0x21b   : > { %v1432_v40 = vpop.f32.mrf.mxu2  ;;  %v1337_v3 = vpop.f32.mrf.mxu0 }
 0x21c   : > { %v1433_v38 = vadd.f32 %v1432_v40, %v1384_v5  ;;  %v1338_v43 = vadd.f32 %v1337_v3, %v3199_v48  ;;  %v1386_v41 = vpop.f32.mrf.mxu1 }
 0x21d   : > { %v1387_v15 = vadd.f32 %v1386_v41, %v3204_v34 }
 0x21e   : > { %v1482_v55 = vadd.f32 %v1481_v39, %v1433_v38  ;;  %1547 = vst [vmem:[%s2846_s26 + $0x1d0] sm:$0xff] %v1338_v43 }
 0x220   : > { %1544 = vst [vmem:[%s2846_s26 + $0x1b8] sm:$0xff] %v1482_v55 }
 0x222   : > { %v1484_v30 = vpop.f32.mrf.mxu3 }
 0x223   : > { %v1435_v28 = vpop.f32.mrf.mxu2  ;;  %v1339_v33 = vpop.f32.mrf.mxu0 }
 0x224   : > { %v1436_v7 = vadd.f32 %v1435_v28, %v1387_v15  ;;  %v1340_v19 = vadd.f32 %v1339_v33, %v3207_v10  ;;  %v1388_v63 = vpop.f32.mrf.mxu1 }
 0x225   : > { %v1389_v31 = vadd.f32 %v1388_v63, %v3204_v34 }
 0x226   : > { %v1485_v35 = vadd.f32 %v1484_v30, %v1436_v7  ;;  %1551 = vst [vmem:[%s2846_s26 + $0x1f0] sm:$0xff] %v1340_v19 }
 0x228   : > { %1548 = vst [vmem:[%s2846_s26 + $0x1d8] sm:$0xff] %v1485_v35 }
 0x22a   : > { %v1486_v54 = vpop.f32.mrf.mxu3 }
 0x22b   : > { %v1437_v48 = vpop.f32.mrf.mxu2 }
 0x22c   : > { %v1438_v44 = vadd.f32 %v1437_v48, %v1389_v31 }
 0x22e   : > { %v1487_v56 = vadd.f32 %v1486_v54, %v1438_v44 }
 0x230   : > { %1552 = vst [vmem:[%s2846_s26 + $0x1f8] sm:$0xff] %v1487_v56 }
 0x231 PF: > { %s13_s14 = sadd.s32 1, %s2206_s14   ;;  %s3285_s12 = smov %s2202_s13 }
 0x232   : > { %p10_p5 = scmp.ge.s32.totalorder %s13_s14, 4   ;;  %s3286_s13 = smov %s3288_s15 }
 0x234   :  { %12 = sbr.rel (!%p10_p5) target bundleno = 2 (0x2), region = 68 }

</bundles_post_ra>
